<compile_context>
chip_gen: v7x
topology: tpu7x:2x2x1
jax: 0.10.0
libtpu: 0.0.40
codegen_flags: <defaults>
</compile_context>

<pallas_src>
import jax
import jax.numpy as jnp
from jax.experimental import pallas as pl
from jax.experimental.pallas import tpu as pltpu


LEAKY_SLOPE = 0.2
SCO_S = 1.0
SCO_B = 0.1


def _leaky_relu(x, slope):
    return jnp.where(x > 0, x, slope * x)


def _sco_relu(x, s, b):
    # TODO(synk): `ac.sco_relu(s, b)` has no public definition; implemented as a
    # parametric leaky-relu f(x) = s*x for x>0 else b*x (with s=1, b=0.1).
    return jnp.where(x > 0, s * x, b * x)


def _round_up(x, m):
    return ((x + m - 1) // m) * m


def decoder_kernel(z_ref,
                   w1_ref, b1_ref,
                   w2_ref, b2_ref,
                   w3_ref, b3_ref,
                   w4_ref, b4_ref,
                   out_ref):
    # Activations are bf16 at every matmul boundary; accumulation, bias add and
    # the LeakyReLU / sco_relu run in f32 (VPU slots have slack — DMA-bound).
    x = z_ref[...]  # already bf16 (cast in the wrapper)

    h = jnp.dot(x, w1_ref[...], preferred_element_type=jnp.float32) + b1_ref[...]
    h = _leaky_relu(h, LEAKY_SLOPE).astype(jnp.bfloat16)

    h = jnp.dot(h, w2_ref[...], preferred_element_type=jnp.float32) + b2_ref[...]
    h = _leaky_relu(h, LEAKY_SLOPE).astype(jnp.bfloat16)

    h = jnp.dot(h, w3_ref[...], preferred_element_type=jnp.float32) + b3_ref[...]
    h = _leaky_relu(h, LEAKY_SLOPE).astype(jnp.bfloat16)

    y = jnp.dot(h, w4_ref[...], preferred_element_type=jnp.float32) + b4_ref[...]
    out_ref[...] = _sco_relu(y, SCO_S, SCO_B).astype(out_ref.dtype)


def decoder_forward(z, params, *, block_rows=2048):
    """Fused MLP decoder forward.

    z:      [B, latent_dim] float; cast to bf16 for the MXU / DMA.
    params: dict with w1..w4 ([in, out], bf16) and b1..b4 ([1, out], f32).
    Returns [B, output_dim] float32.
    """
    B, latent_dim = z.shape
    out_dim = params["w4"].shape[1]

    # Batch tiling:
    #   * at least 2 grid steps (and an even count) so ("parallel",) can shard
    #     the batch across both TensorCores on v7x; extra step is noise on
    #     v6e/v5e.
    #   * tiles capped near `block_rows` rows and forced to a multiple of 8
    #     sublanes (robust to any caller-supplied block_rows / odd B).
    n_steps = max(2, pl.cdiv(B, max(block_rows, 8)))
    n_steps += n_steps % 2                     # keep the grid length even
    tb = _round_up(pl.cdiv(B, n_steps), 8)     # sublane-aligned tile
    b_pad = _round_up(B, tb)
    grid = b_pad // tb

    zb = z.astype(jnp.bfloat16)
    if b_pad != B:
        zb = jnp.pad(zb, ((0, b_pad - B), (0, 0)))

    def resident(shape):
        # Whole array lives in VMEM; same block index every grid step, so it is
        # loaded once and reused across all batch tiles (~110 KB total).
        return pl.BlockSpec(shape, lambda i: tuple(0 for _ in shape))

    operands = (zb,
                params["w1"], params["b1"],
                params["w2"], params["b2"],
                params["w3"], params["b3"],
                params["w4"], params["b4"])

    in_specs = [pl.BlockSpec((tb, latent_dim), lambda i: (i, 0))]
    in_specs += [resident(op.shape) for op in operands[1:]]

    out = pl.pallas_call(
        decoder_kernel,
        out_shape=jax.ShapeDtypeStruct((b_pad, out_dim), jnp.float32),
        grid=(grid,),
        in_specs=in_specs,
        # True-width output block (last dim == full array dim, so the (8,128)
        # rule is satisfied); no lane padding -> no 8x write amplification and
        # no post-kernel column-slice copy.
        out_specs=pl.BlockSpec((tb, out_dim), lambda i: (i, 0)),
        compiler_params=pltpu.CompilerParams(
            dimension_semantics=("parallel",),   # shard batch across TCs (v7x)
        ),
    )(*operands)

    if b_pad != B:
        out = out[:B]
    return out


def init_params(latent_dim, hidden_dim, output_dim):
    """Deterministic synthetic parameters (no checkpoint load)."""
    key = jax.random.PRNGKey(0)
    dims = [
        (latent_dim, hidden_dim),
        (hidden_dim, hidden_dim * 2),
        (hidden_dim * 2, hidden_dim * 4),
        (hidden_dim * 4, output_dim),
    ]
    params = {}
    for idx, (d_in, d_out) in enumerate(dims, start=1):
        key, kw, kb = jax.random.split(key, 3)
        scale = 1.0 / jnp.sqrt(jnp.float32(d_in))
        w = jax.random.uniform(kw, (d_in, d_out), jnp.float32, -scale, scale)
        b = jax.random.uniform(kb, (1, d_out), jnp.float32, -scale, scale)
        params[f"w{idx}"] = w.astype(jnp.bfloat16)   # bf16 weights: MXU-native, half DMA
        params[f"b{idx}"] = b                        # f32 bias, added to f32 accumulator
    return params


def reference_forward(z, params):
    """Plain-JAX reference with the same bf16-at-matmul-boundary numerics."""

    def layer(x, w, b):
        return jnp.dot(x.astype(jnp.bfloat16), w,
                       preferred_element_type=jnp.float32) + b

    h = _leaky_relu(layer(z, params["w1"], params["b1"]), LEAKY_SLOPE)
    h = _leaky_relu(layer(h, params["w2"], params["b2"]), LEAKY_SLOPE)
    h = _leaky_relu(layer(h, params["w3"], params["b3"]), LEAKY_SLOPE)
    y = layer(h, params["w4"], params["b4"])
    return _sco_relu(y, SCO_S, SCO_B)


if __name__ == "__main__":
    latent_dim, hidden_dim, output_dim = 16, 32, 16
    batch = 512   # small, but enough rows to exercise the batch-tiled grid

    params = init_params(latent_dim, hidden_dim, output_dim)

    key = jax.random.PRNGKey(0)
    z = jax.random.normal(key, (batch, latent_dim), jnp.float32)

    out = decoder_forward(z, params)
    out = jax.block_until_ready(out)

    ref = reference_forward(z, params)
    assert out.shape == (batch, output_dim)
    assert jnp.allclose(out, ref, atol=2e-3, rtol=2e-3), \
        float(jnp.max(jnp.abs(out - ref)))

    print("KERNEL_OK")
</pallas_src>

<mosaic_0001>
module attributes {stable_mosaic.version = 11 : i64} {
  func.func @decoder_kernel(%arg0: i32, %arg1: memref<256x16xbf16, #tpu.memory_space<vmem>>, %arg2: memref<16x32xbf16, #tpu.memory_space<vmem>>, %arg3: memref<1x32xf32, #tpu.memory_space<vmem>>, %arg4: memref<32x64xbf16, #tpu.memory_space<vmem>>, %arg5: memref<1x64xf32, #tpu.memory_space<vmem>>, %arg6: memref<64x128xbf16, #tpu.memory_space<vmem>>, %arg7: memref<1x128xf32, #tpu.memory_space<vmem>>, %arg8: memref<128x16xbf16, #tpu.memory_space<vmem>>, %arg9: memref<1x16xf32, #tpu.memory_space<vmem>>, %arg10: memref<256x16xf32, #tpu.memory_space<vmem>>) attributes {dimension_semantics = [#tpu.dimension_semantics<parallel>], iteration_bounds = array<i64: 2>, scalar_prefetch = 0 : i64, scratch_operands = 0 : i64, tpu.core_type = #tpu.core_type<tc>, window_params = [{transform_indices = @transform_0, window_bounds = array<i64: 256, 16>}, {pipeline_mode = #tpu.pipeline_mode<synchronous>, transform_indices = @transform_1, window_bounds = array<i64: 16, 32>}, {pipeline_mode = #tpu.pipeline_mode<synchronous>, transform_indices = @transform_2, window_bounds = array<i64: 1, 32>}, {pipeline_mode = #tpu.pipeline_mode<synchronous>, transform_indices = @transform_3, window_bounds = array<i64: 32, 64>}, {pipeline_mode = #tpu.pipeline_mode<synchronous>, transform_indices = @transform_4, window_bounds = array<i64: 1, 64>}, {pipeline_mode = #tpu.pipeline_mode<synchronous>, transform_indices = @transform_5, window_bounds = array<i64: 64, 128>}, {pipeline_mode = #tpu.pipeline_mode<synchronous>, transform_indices = @transform_6, window_bounds = array<i64: 1, 128>}, {pipeline_mode = #tpu.pipeline_mode<synchronous>, transform_indices = @transform_7, window_bounds = array<i64: 128, 16>}, {pipeline_mode = #tpu.pipeline_mode<synchronous>, transform_indices = @transform_8, window_bounds = array<i64: 1, 16>}, {transform_indices = @transform_9, window_bounds = array<i64: 256, 16>}]} {
    %c0 = arith.constant 0 : index
    %c0_0 = arith.constant 0 : index
    %0 = vector.load %arg1[%c0, %c0_0] : memref<256x16xbf16, #tpu.memory_space<vmem>>, vector<256x16xbf16>
    %c0_1 = arith.constant 0 : index
    %c0_2 = arith.constant 0 : index
    %1 = vector.load %arg2[%c0_1, %c0_2] : memref<16x32xbf16, #tpu.memory_space<vmem>>, vector<16x32xbf16>
    %cst = arith.constant dense<0.000000e+00> : vector<256x32xf32>
    %2 = tpu.matmul %0, %1, %cst {dimension_numbers = #tpu.dot_dimension_numbers<[1], [0], [0], [1], [0, 0, 1, 1], [], []>} : vector<256x16xbf16>, vector<16x32xbf16>, vector<256x32xf32> -> vector<256x32xf32>
    %c0_3 = arith.constant 0 : index
    %c0_4 = arith.constant 0 : index
    %3 = vector.load %arg3[%c0_3, %c0_4] : memref<1x32xf32, #tpu.memory_space<vmem>>, vector<1x32xf32>
    %4 = vector.broadcast %3 : vector<1x32xf32> to vector<256x32xf32>
    %5 = arith.addf %2, %4 : vector<256x32xf32>
    %cst_5 = arith.constant 0.000000e+00 : f32
    %6 = vector.broadcast %cst_5 : f32 to vector<256x32xf32>
    %7 = arith.cmpf ogt, %5, %6 : vector<256x32xf32>
    %cst_6 = arith.constant 2.000000e-01 : f32
    %8 = vector.broadcast %cst_6 : f32 to vector<256x32xf32>
    %9 = arith.mulf %8, %5 : vector<256x32xf32>
    %10 = arith.select %7, %5, %9 : vector<256x32xi1>, vector<256x32xf32>
    %11 = arith.truncf %10 : vector<256x32xf32> to vector<256x32xbf16>
    %c0_7 = arith.constant 0 : index
    %c0_8 = arith.constant 0 : index
    %12 = vector.load %arg4[%c0_7, %c0_8] : memref<32x64xbf16, #tpu.memory_space<vmem>>, vector<32x64xbf16>
    %cst_9 = arith.constant dense<0.000000e+00> : vector<256x64xf32>
    %13 = tpu.matmul %11, %12, %cst_9 {dimension_numbers = #tpu.dot_dimension_numbers<[1], [0], [0], [1], [0, 0, 1, 1], [], []>} : vector<256x32xbf16>, vector<32x64xbf16>, vector<256x64xf32> -> vector<256x64xf32>
    %c0_10 = arith.constant 0 : index
    %c0_11 = arith.constant 0 : index
    %14 = vector.load %arg5[%c0_10, %c0_11] : memref<1x64xf32, #tpu.memory_space<vmem>>, vector<1x64xf32>
    %15 = vector.broadcast %14 : vector<1x64xf32> to vector<256x64xf32>
    %16 = arith.addf %13, %15 : vector<256x64xf32>
    %cst_12 = arith.constant 0.000000e+00 : f32
    %17 = vector.broadcast %cst_12 : f32 to vector<256x64xf32>
    %18 = arith.cmpf ogt, %16, %17 : vector<256x64xf32>
    %cst_13 = arith.constant 2.000000e-01 : f32
    %19 = vector.broadcast %cst_13 : f32 to vector<256x64xf32>
    %20 = arith.mulf %19, %16 : vector<256x64xf32>
    %21 = arith.select %18, %16, %20 : vector<256x64xi1>, vector<256x64xf32>
    %22 = arith.truncf %21 : vector<256x64xf32> to vector<256x64xbf16>
    %c0_14 = arith.constant 0 : index
    %c0_15 = arith.constant 0 : index
    %23 = vector.load %arg6[%c0_14, %c0_15] : memref<64x128xbf16, #tpu.memory_space<vmem>>, vector<64x128xbf16>
    %cst_16 = arith.constant dense<0.000000e+00> : vector<256x128xf32>
    %24 = tpu.matmul %22, %23, %cst_16 {dimension_numbers = #tpu.dot_dimension_numbers<[1], [0], [0], [1], [0, 0, 1, 1], [], []>} : vector<256x64xbf16>, vector<64x128xbf16>, vector<256x128xf32> -> vector<256x128xf32>
    %c0_17 = arith.constant 0 : index
    %c0_18 = arith.constant 0 : index
    %25 = vector.load %arg7[%c0_17, %c0_18] : memref<1x128xf32, #tpu.memory_space<vmem>>, vector<1x128xf32>
    %26 = vector.broadcast %25 : vector<1x128xf32> to vector<256x128xf32>
    %27 = arith.addf %24, %26 : vector<256x128xf32>
    %cst_19 = arith.constant 0.000000e+00 : f32
    %28 = vector.broadcast %cst_19 : f32 to vector<256x128xf32>
    %29 = arith.cmpf ogt, %27, %28 : vector<256x128xf32>
    %cst_20 = arith.constant 2.000000e-01 : f32
    %30 = vector.broadcast %cst_20 : f32 to vector<256x128xf32>
    %31 = arith.mulf %30, %27 : vector<256x128xf32>
    %32 = arith.select %29, %27, %31 : vector<256x128xi1>, vector<256x128xf32>
    %33 = arith.truncf %32 : vector<256x128xf32> to vector<256x128xbf16>
    %c0_21 = arith.constant 0 : index
    %c0_22 = arith.constant 0 : index
    %34 = vector.load %arg8[%c0_21, %c0_22] : memref<128x16xbf16, #tpu.memory_space<vmem>>, vector<128x16xbf16>
    %cst_23 = arith.constant dense<0.000000e+00> : vector<256x16xf32>
    %35 = tpu.matmul %33, %34, %cst_23 {dimension_numbers = #tpu.dot_dimension_numbers<[1], [0], [0], [1], [0, 0, 1, 1], [], []>} : vector<256x128xbf16>, vector<128x16xbf16>, vector<256x16xf32> -> vector<256x16xf32>
    %c0_24 = arith.constant 0 : index
    %c0_25 = arith.constant 0 : index
    %36 = vector.load %arg9[%c0_24, %c0_25] : memref<1x16xf32, #tpu.memory_space<vmem>>, vector<1x16xf32>
    %37 = vector.broadcast %36 : vector<1x16xf32> to vector<256x16xf32>
    %38 = arith.addf %35, %37 : vector<256x16xf32>
    %cst_26 = arith.constant 0.000000e+00 : f32
    %39 = vector.broadcast %cst_26 : f32 to vector<256x16xf32>
    %40 = arith.cmpf ogt, %38, %39 : vector<256x16xf32>
    %cst_27 = arith.constant 1.000000e+00 : f32
    %41 = vector.broadcast %cst_27 : f32 to vector<256x16xf32>
    %42 = arith.mulf %41, %38 : vector<256x16xf32>
    %cst_28 = arith.constant 1.000000e-01 : f32
    %43 = vector.broadcast %cst_28 : f32 to vector<256x16xf32>
    %44 = arith.mulf %43, %38 : vector<256x16xf32>
    %45 = arith.select %40, %42, %44 : vector<256x16xi1>, vector<256x16xf32>
    %c0_29 = arith.constant 0 : index
    %c0_30 = arith.constant 0 : index
    %46 = vector.load %arg10[%c0_29, %c0_30] : memref<256x16xf32, #tpu.memory_space<vmem>>, vector<256x16xf32>
    tpu.vector_store %arg10[%c0_29, %c0_30], %45 {strides = array<i32>} : memref<256x16xf32, #tpu.memory_space<vmem>>, vector<256x16xf32>,
    return
  }
  func.func @transform_0(%arg0: i32) -> (i32, i32) {
    %c0_i32 = arith.constant 0 : i32
    %c0_i32_0 = arith.constant 0 : i32
    return %arg0, %c0_i32 : i32, i32
  }
  func.func @transform_1(%arg0: i32) -> (i32, i32) {
    %c0_i32 = arith.constant 0 : i32
    %c0_i32_0 = arith.constant 0 : i32
    %c0_i32_1 = arith.constant 0 : i32
    return %c0_i32, %c0_i32_0 : i32, i32
  }
  func.func @transform_2(%arg0: i32) -> (i32, i32) {
    %c0_i32 = arith.constant 0 : i32
    %c0_i32_0 = arith.constant 0 : i32
    %c0_i32_1 = arith.constant 0 : i32
    return %c0_i32, %c0_i32_0 : i32, i32
  }
  func.func @transform_3(%arg0: i32) -> (i32, i32) {
    %c0_i32 = arith.constant 0 : i32
    %c0_i32_0 = arith.constant 0 : i32
    %c0_i32_1 = arith.constant 0 : i32
    return %c0_i32, %c0_i32_0 : i32, i32
  }
  func.func @transform_4(%arg0: i32) -> (i32, i32) {
    %c0_i32 = arith.constant 0 : i32
    %c0_i32_0 = arith.constant 0 : i32
    %c0_i32_1 = arith.constant 0 : i32
    return %c0_i32, %c0_i32_0 : i32, i32
  }
  func.func @transform_5(%arg0: i32) -> (i32, i32) {
    %c0_i32 = arith.constant 0 : i32
    %c0_i32_0 = arith.constant 0 : i32
    %c0_i32_1 = arith.constant 0 : i32
    return %c0_i32, %c0_i32_0 : i32, i32
  }
  func.func @transform_6(%arg0: i32) -> (i32, i32) {
    %c0_i32 = arith.constant 0 : i32
    %c0_i32_0 = arith.constant 0 : i32
    %c0_i32_1 = arith.constant 0 : i32
    return %c0_i32, %c0_i32_0 : i32, i32
  }
  func.func @transform_7(%arg0: i32) -> (i32, i32) {
    %c0_i32 = arith.constant 0 : i32
    %c0_i32_0 = arith.constant 0 : i32
    %c0_i32_1 = arith.constant 0 : i32
    return %c0_i32, %c0_i32_0 : i32, i32
  }
  func.func @transform_8(%arg0: i32) -> (i32, i32) {
    %c0_i32 = arith.constant 0 : i32
    %c0_i32_0 = arith.constant 0 : i32
    %c0_i32_1 = arith.constant 0 : i32
    return %c0_i32, %c0_i32_0 : i32, i32
  }
  func.func @transform_9(%arg0: i32) -> (i32, i32) {
    %c0_i32 = arith.constant 0 : i32
    %c0_i32_0 = arith.constant 0 : i32
    return %arg0, %c0_i32 : i32, i32
  }
}

</mosaic_0001>

<bundles_post_ra>
// kernel: tpu_custom_call.1
= control target key start
LH: loop header
LB: loop body
LE: loop exit
PB: predicated region body
PF: predicated region fallthrough
CT: control target
= control target key end

     0   :  { %s2336_s30 = smov 0   ;;  %s2682_s0 = inlined_call_operand.vmem [shape: bf16[512,16], index: 0, kind: input, shape index: {}]   ;;  %s2683_s1 = inlined_call_operand.vmem [shape: bf16[16,32], index: 1, kind: input, shape index: {}]   ;;  %s2684_s2 = inlined_call_operand.vmem [shape: f32[1,32], index: 2, kind: input, shape index: {}]   ;;  %s2685_s3 = inlined_call_operand.vmem [shape: bf16[32,64], index: 3, kind: input, shape index: {}]   ;;  %s2686_s4 = inlined_call_operand.vmem [shape: f32[1,64], index: 4, kind: input, shape index: {}]   ;;  %s2687_s5 = inlined_call_operand.vmem [shape: bf16[64,128], index: 5, kind: input, shape index: {}]   ;;  %s2688_s6 = inlined_call_operand.vmem [shape: f32[1,128], index: 6, kind: input, shape index: {}]   ;;  %s2689_s7 = inlined_call_operand.vmem [shape: bf16[128,16], index: 7, kind: input, shape index: {}]   ;;  %s2690_s8 = inlined_call_operand.vmem [shape: f32[1,16], index: 8, kind: input, shape index: {}]   ;;  %s2691_s9 = inlined_call_operand.vmem [shape: f32[512,16], index: 9, kind: output, shape index: {}]  }
   0x1 LB: > { %s1908_s10 = sadd.s32 4294967295, %s2284_s30   ;;  %p1912_p0 = scmp.ge.s32.totalorder %s2284_s30, 1  ;;  %s2284_s30 = sphi %s2336_s30, %s19_s30  }
   0x2   : > { %p288_p1 = scmp.lt.s32.totalorder %s2284_s30, 3 }
   0x4   : > { %p289_p2 = pnand %p1912_p0, %p288_p1 }
   0x5   : > { %v2247_v0 = vld [vmem:[%s2683_s1] sm:$0xff] (!%p289_p2)   ;;  %s1913_s13 = sshll.u32 (!%p289_p2), %s1908_s10, 5  ;;  %vm464_vm0 = vcmask (!%p289_p2), 130048   ;;  %v2265_v18 = vld [vmem:[%s2685_s3 + $0x8] sm:$0xff] (!%p289_p2)   ;;  %v2268_v21 = vld [vmem:[%s2687_s5 + $0x10] sm:$0xff] (!%p289_p2)   ;;  %vm809_vm5 = vcmask (!%p289_p2), 261120  }
   0x6   : > { %292 = sbr.rel (%p289_p2) target bundleno = 964 (0x3c4), region = 56  ;;  %p325_p3 = scmp.lt.s32.totalorder (!%p289_p2), %s1913_s13, 63  ;;  %2081 = vmatprep.subr.bf16.mxu0 (!%p289_p2), %v2247_v0  ;;  %v2264_v17 = vld [vmem:[%s2685_s3] sm:$0xff] (!%p289_p2)   ;;  %v2267_v20 = vld [vmem:[%s2687_s5 + $0x8] sm:$0xff] (!%p289_p2)   ;;  %v2269_v22 = vld [vmem:[%s2687_s5 + $0x18] sm:$0xff] (!%p289_p2)  }
   0x7   : > { %2082 = vmatpush3.bf16.msra.mxu0 (!%p289_p2), %v2247_v0  ;;  %2115 = vmatprep.subr.bf16.mxu1 (!%p289_p2), %v2264_v17  ;;  %v2266_v19 = vld [vmem:[%s2687_s5] sm:$0xff] (!%p289_p2)  }
   0x8   : > { %2116 = vmatpush3.bf16.msra.mxu1 (!%p289_p2), %v2264_v17  ;;  %2151 = vmatprep.subr.bf16.mxu0 (!%p289_p2), %v2266_v19  ;;  %v2408_v23 = vld [vmem:[%s2684_s2] ss:$0 sm:$0xff] (!%p289_p2) }
   0x9   : > { %2117 = vmatprep.subr.bf16.mxu1 (!%p289_p2), %v2265_v18 }
   0xc   : > { %2118 = vmatpush3.bf16.msra.mxu1 (!%p289_p2), %v2265_v18 }
   0xd   : > { %s2693_s13 = smov (!%p325_p3, %s1913_s13), 63 }
   0xe   : > { %s1914_s14 = sshll.u32 %s2693_s13, 2  ;;  %s1916_s16 = sshll.u32 %s2693_s13, 3 }
   0xf   : > { %s2353_s17 = scalar_lea.vmem %s2682_s0, %s1914_s14  ;;  %s2583_s19 = scalar_lea.vmem %s2691_s9, %s1916_s16 }
  0x10   : > { %v2248_v1 = vld [vmem:[%s2353_s17] sm:$0xff]   ;;  %v2249_v2 = vld [vmem:[%s2353_s17 + $0x8] sm:$0xff]   ;;  %v2250_v3 = vld [vmem:[%s2353_s17 + $0x10] sm:$0xff]  }
  0x11   : > { %2083 = vmatprep.mubr.msk.bf16.mxu0 %vm464_vm0, %v2248_v1  ;;  %v2251_v4 = vld [vmem:[%s2353_s17 + $0x18] sm:$0xff]   ;;  %v2252_v5 = vld [vmem:[%s2353_s17 + $0x20] sm:$0xff]   ;;  %v2253_v6 = vld [vmem:[%s2353_s17 + $0x28] sm:$0xff]  }
  0x12   : > { %2084 = vmatmul.mubr.msk.bf16.vlgmr.msra.gmra.mrb[0].mxu0 %vm464_vm0, %v2249_v2  ;;  %v2254_v7 = vld [vmem:[%s2353_s17 + $0x30] sm:$0xff]   ;;  %v2255_v8 = vld [vmem:[%s2353_s17 + $0x38] sm:$0xff]   ;;  %v2256_v9 = vld [vmem:[%s2353_s17 + $0x40] sm:$0xff]  }
  0x13   : > { %2087 = vmatprep.mubr.msk.bf16.mxu0 %vm464_vm0, %v2250_v3  ;;  %v2257_v10 = vld [vmem:[%s2353_s17 + $0x48] sm:$0xff]   ;;  %v2258_v11 = vld [vmem:[%s2353_s17 + $0x50] sm:$0xff]   ;;  %v2259_v12 = vld [vmem:[%s2353_s17 + $0x58] sm:$0xff]   ;;  %2152 = vmatpush3.bf16.msra.mxu0 %v2266_v19 }
  0x14   : > { %v2260_v13 = vld [vmem:[%s2353_s17 + $0x60] sm:$0xff]   ;;  %v2261_v14 = vld [vmem:[%s2353_s17 + $0x68] sm:$0xff]   ;;  %v2262_v15 = vld [vmem:[%s2353_s17 + $0x70] sm:$0xff]   ;;  %2153 = vmatprep.subr.bf16.mxu0 %v2267_v20 }
  0x15   : > { %v2263_v16 = vld [vmem:[%s2353_s17 + $0x78] sm:$0xff]  }
  0x17   : > { %2154 = vmatpush3.bf16.msra.mxu0 %v2267_v20 }
  0x18   : > { %2155 = vmatprep.subr.bf16.mxu0 %v2268_v21 }
  0x1a   : > { %2088 = vmatmul.mubr.msk.bf16.gmra.mrb[4].mxu0 %vm464_vm0, %v2251_v4 }
  0x1b   : > { %2091 = vmatprep.mubr.msk.bf16.mxu0 %vm464_vm0, %v2252_v5  ;;  %2156 = vmatpush3.bf16.msra.mxu0 %v2268_v21 }
  0x1c   : > { %2157 = vmatprep.subr.bf16.mxu0 %v2269_v22 }
  0x1f   : > { %2158 = vmatpush3.bf16.msra.mxu0 %v2269_v22 }
  0x22   : > { %2092 = vmatmul.mubr.msk.bf16.gmra.mrb[8].mxu0 %vm464_vm0, %v2253_v6 }
  0x23   : > { %2095 = vmatprep.mubr.msk.bf16.mxu0 %vm464_vm0, %v2254_v7 }
  0x2a   : > { %2096 = vmatmul.mubr.msk.bf16.gmra.mrb[12].mxu0 %vm464_vm0, %v2255_v8 }
  0x2b   : > { %2099 = vmatprep.mubr.msk.bf16.mxu0 %vm464_vm0, %v2256_v9 }
  0x32   : > { %2100 = vmatmul.mubr.msk.bf16.gmra.mrb[16].mxu0 %vm464_vm0, %v2257_v10 }
  0x33   : > { %2103 = vmatprep.mubr.msk.bf16.mxu0 %vm464_vm0, %v2258_v11 }
  0x3a   : > { %2104 = vmatmul.mubr.msk.bf16.gmra.mrb[20].mxu0 %vm464_vm0, %v2259_v12 }
  0x3b   : > { %2107 = vmatprep.mubr.msk.bf16.mxu0 %vm464_vm0, %v2260_v13 }
  0x42   : > { %2108 = vmatmul.mubr.msk.bf16.gmra.mrb[24].mxu0 %vm464_vm0, %v2261_v14 }
  0x43   : > { %2111 = vmatprep.mubr.msk.bf16.mxu0 %vm464_vm0, %v2262_v15 }
  0x4a   : > { %2112 = vmatmul.mubr.msk.bf16.gmra.mrb[28].mxu0 %vm464_vm0, %v2263_v16 }
  0xe5   : > { %v2085_v24 = vpop.f32.mrb[0].mxu0 }
  0xe6   : > { %v556_v25 = vadd.f32 %v2085_v24, %v2408_v23  ;;  %v547_v26 = vpop.f32.mrb[1].mxu0 }
  0xe7   : > { %v548_v27 = vadd.f32 %v2408_v23, %v547_v26  ;;  %v2086_v28 = vpop.f32.mrb[2].mxu0 }
  0xe8   : > { %v708_v29 = vmul.f32 0.2, %v556_v25  ;;  %v559_v30 = vadd.f32 %v2086_v28, %v2408_v23  ;;  %v550_v31 = vpop.f32.mrb[3].mxu0  ;;  %vm676_vm1 = vcmp.gt.f32.partialorder %v556_v25, 0.0 }
  0xe9   : > { %v706_v32 = vmul.f32 0.2, %v548_v27  ;;  %v551_v33 = vadd.f32 %v2408_v23, %v550_v31  ;;  %vm674_vm3 = vcmp.gt.f32.partialorder %v548_v27, 0.0 }
  0xea   : > { %vm677_vm2 = vcmp.gt.f32.partialorder %v559_v30, 0.0  ;;  %v709_v34 = vmul.f32 0.2, %v559_v30  ;;  %v740_v36 = vsel %vm676_vm1, %v556_v25, %v708_v29 }
  0xeb   : > { %v707_v35 = vmul.f32 0.2, %v551_v33  ;;  %vm675_vm4 = vcmp.gt.f32.partialorder %v551_v33, 0.0  ;;  %v738_v40 = vsel %vm674_vm3, %v548_v27, %v706_v32 }
  0xec   : > { %v741_v37 = vsel %vm677_vm2, %v559_v30, %v709_v34 }
  0xed   : > { %v771_v38 = vpack.c.bf16 %v741_v37, %v740_v36  ;;  %v2089_v39 = vpop.f32.mrb[4].mxu0  ;;  %v739_v41 = vsel %vm675_vm4, %v551_v33, %v707_v35 }
  0xee   : > { %v572_v42 = vadd.f32 %v2089_v39, %v2408_v23  ;;  %v563_v43 = vpop.f32.mrb[5].mxu0  ;;  %v770_v44 = vpack.c.bf16 %v739_v41, %v738_v40 }
  0xef   : > { %v564_v45 = vadd.f32 %v2408_v23, %v563_v43  ;;  %v2090_v46 = vpop.f32.mrb[6].mxu0 }
  0xf0   : > { %v712_v47 = vmul.f32 0.2, %v572_v42  ;;  %v575_v48 = vadd.f32 %v2090_v46, %v2408_v23  ;;  %v566_v49 = vpop.f32.mrb[7].mxu0  ;;  %2119 = vmatprep.mubr.msk.bf16.mxu1 %vm809_vm5, %v770_v44  ;;  %vm680_vm6 = vcmp.gt.f32.partialorder %v572_v42, 0.0 }
  0xf1   : > { %v710_v50 = vmul.f32 0.2, %v564_v45  ;;  %v567_v51 = vadd.f32 %v2408_v23, %v566_v49  ;;  %2120 = vmatmul.mubr.msk.bf16.vlgmr.msra.gmra.mrb[0].mxu1 %vm809_vm5, %v771_v38  ;;  %vm678_vm7 = vcmp.gt.f32.partialorder %v564_v45, 0.0 }
  0xf2   : > { %vm681_vm8 = vcmp.gt.f32.partialorder %v575_v48, 0.0  ;;  %v713_v52 = vmul.f32 0.2, %v575_v48  ;;  %v744_v54 = vsel %vm680_vm6, %v572_v42, %v712_v47 }
  0xf3   : > { %vm679_vm9 = vcmp.gt.f32.partialorder %v567_v51, 0.0  ;;  %v711_v53 = vmul.f32 0.2, %v567_v51  ;;  %v742_v56 = vsel %vm678_vm7, %v564_v45, %v710_v50 }
  0xf4   : > { %v745_v55 = vsel %vm681_vm8, %v575_v48, %v713_v52 }
  0xf5   : > { %v773_v57 = vpack.c.bf16 %v745_v55, %v744_v54  ;;  %v743_v58 = vsel %vm679_vm9, %v567_v51, %v711_v53  ;;  %v2093_v59 = vpop.f32.mrb[8].mxu0 }
  0xf6   : > { %v772_v60 = vpack.c.bf16 %v743_v58, %v742_v56  ;;  %v588_v61 = vadd.f32 %v2093_v59, %v2408_v23  ;;  %v579_v62 = vpop.f32.mrb[9].mxu0 }
  0xf7   : > { %v580_v63 = vadd.f32 %v2408_v23, %v579_v62  ;;  %v2094_v0 = vpop.f32.mrb[10].mxu0 }
  0xf8   : > { %v716_v1 = vmul.f32 0.2, %v588_v61  ;;  %v591_v2 = vadd.f32 %v2094_v0, %v2408_v23  ;;  %v582_v3 = vpop.f32.mrb[11].mxu0  ;;  %2123 = vmatprep.mubr.msk.bf16.mxu1 %vm809_vm5, %v772_v60  ;;  %vm684_vm10 = vcmp.gt.f32.partialorder %v588_v61, 0.0 }
  0xf9   : > { %v714_v4 = vmul.f32 0.2, %v580_v63  ;;  %v583_v5 = vadd.f32 %v2408_v23, %v582_v3  ;;  %2124 = vmatmul.mubr.msk.bf16.gmra.mrb[4].mxu1 %vm809_vm5, %v773_v57  ;;  %vm682_vm11 = vcmp.gt.f32.partialorder %v580_v63, 0.0 }
  0xfa   : > { %vm685_vm12 = vcmp.gt.f32.partialorder %v591_v2, 0.0  ;;  %v717_v6 = vmul.f32 0.2, %v591_v2  ;;  %v748_v8 = vsel %vm684_vm10, %v588_v61, %v716_v1 }
  0xfb   : > { %vm683_vm13 = vcmp.gt.f32.partialorder %v583_v5, 0.0  ;;  %v715_v7 = vmul.f32 0.2, %v583_v5  ;;  %v746_v10 = vsel %vm682_vm11, %v580_v63, %v714_v4 }
  0xfc   : > { %v749_v9 = vsel %vm685_vm12, %v591_v2, %v717_v6 }
  0xfd   : > { %v775_v11 = vpack.c.bf16 %v749_v9, %v748_v8  ;;  %v747_v12 = vsel %vm683_vm13, %v583_v5, %v715_v7  ;;  %v2097_v13 = vpop.f32.mrb[12].mxu0 }
  0xfe   : > { %v774_v14 = vpack.c.bf16 %v747_v12, %v746_v10  ;;  %v604_v15 = vadd.f32 %v2097_v13, %v2408_v23  ;;  %v595_v16 = vpop.f32.mrb[13].mxu0 }
  0xff   : > { %v596_v17 = vadd.f32 %v2408_v23, %v595_v16  ;;  %v2098_v18 = vpop.f32.mrb[14].mxu0 }
 0x100   : > { %v720_v19 = vmul.f32 0.2, %v604_v15  ;;  %v607_v20 = vadd.f32 %v2098_v18, %v2408_v23  ;;  %v598_v21 = vpop.f32.mrb[15].mxu0  ;;  %2127 = vmatprep.mubr.msk.bf16.mxu1 %vm809_vm5, %v774_v14  ;;  %vm688_vm14 = vcmp.gt.f32.partialorder %v604_v15, 0.0 }
 0x101   : > { %v718_v22 = vmul.f32 0.2, %v596_v17  ;;  %v599_v24 = vadd.f32 %v2408_v23, %v598_v21  ;;  %2128 = vmatmul.mubr.msk.bf16.gmra.mrb[8].mxu1 %vm809_vm5, %v775_v11  ;;  %vm686_vm15 = vcmp.gt.f32.partialorder %v596_v17, 0.0 }
 0x102   : > { %vm689_vm1 = vcmp.gt.f32.partialorder %v607_v20, 0.0  ;;  %v721_v25 = vmul.f32 0.2, %v607_v20  ;;  %v752_v27 = vsel %vm688_vm14, %v604_v15, %v720_v19 }
 0x103   : > { %vm687_vm2 = vcmp.gt.f32.partialorder %v599_v24, 0.0  ;;  %v719_v26 = vmul.f32 0.2, %v599_v24  ;;  %v750_v29 = vsel %vm686_vm15, %v596_v17, %v718_v22 }
 0x104   : > { %v753_v28 = vsel %vm689_vm1, %v607_v20, %v721_v25 }
 0x105   : > { %v777_v30 = vpack.c.bf16 %v753_v28, %v752_v27  ;;  %v751_v31 = vsel %vm687_vm2, %v599_v24, %v719_v26  ;;  %v2101_v32 = vpop.f32.mrb[16].mxu0 }
 0x106   : > { %v776_v33 = vpack.c.bf16 %v751_v31, %v750_v29  ;;  %v620_v34 = vadd.f32 %v2101_v32, %v2408_v23  ;;  %v611_v35 = vpop.f32.mrb[17].mxu0 }
 0x107   : > { %v612_v36 = vadd.f32 %v2408_v23, %v611_v35  ;;  %v2102_v37 = vpop.f32.mrb[18].mxu0 }
 0x108   : > { %v724_v38 = vmul.f32 0.2, %v620_v34  ;;  %v623_v39 = vadd.f32 %v2102_v37, %v2408_v23  ;;  %v614_v40 = vpop.f32.mrb[19].mxu0  ;;  %2131 = vmatprep.mubr.msk.bf16.mxu1 %vm809_vm5, %v776_v33  ;;  %vm692_vm3 = vcmp.gt.f32.partialorder %v620_v34, 0.0 }
 0x109   : > { %v722_v41 = vmul.f32 0.2, %v612_v36  ;;  %v615_v42 = vadd.f32 %v2408_v23, %v614_v40  ;;  %2132 = vmatmul.mubr.msk.bf16.gmra.mrb[12].mxu1 %vm809_vm5, %v777_v30  ;;  %vm690_vm4 = vcmp.gt.f32.partialorder %v612_v36, 0.0 }
 0x10a   : > { %vm693_vm6 = vcmp.gt.f32.partialorder %v623_v39, 0.0  ;;  %v725_v43 = vmul.f32 0.2, %v623_v39  ;;  %v756_v45 = vsel %vm692_vm3, %v620_v34, %v724_v38 }
 0x10b   : > { %vm691_vm7 = vcmp.gt.f32.partialorder %v615_v42, 0.0  ;;  %v723_v44 = vmul.f32 0.2, %v615_v42  ;;  %v754_v47 = vsel %vm690_vm4, %v612_v36, %v722_v41 }
 0x10c   : > { %v757_v46 = vsel %vm693_vm6, %v623_v39, %v725_v43  ;;  %v2272_v43 = vld [vmem:[%s2689_s7 + $0x10] sm:$0xff]  }
 0x10d   : > { %v779_v48 = vpack.c.bf16 %v757_v46, %v756_v45  ;;  %v755_v49 = vsel %vm691_vm7, %v615_v42, %v723_v44  ;;  %v2105_v50 = vpop.f32.mrb[20].mxu0  ;;  %v2271_v42 = vld [vmem:[%s2689_s7 + $0x8] sm:$0xff]   ;;  %v2273_v44 = vld [vmem:[%s2689_s7 + $0x18] sm:$0xff]   ;;  %v2274_v45 = vld [vmem:[%s2689_s7 + $0x20] sm:$0xff]  }
 0x10e   : > { %v778_v51 = vpack.c.bf16 %v755_v49, %v754_v47  ;;  %v636_v52 = vadd.f32 %v2105_v50, %v2408_v23  ;;  %v627_v53 = vpop.f32.mrb[21].mxu0  ;;  %v2275_v46 = vld [vmem:[%s2689_s7 + $0x28] sm:$0xff]   ;;  %v2276_v47 = vld [vmem:[%s2689_s7 + $0x30] sm:$0xff]  }
 0x10f   : > { %v628_v54 = vadd.f32 %v2408_v23, %v627_v53  ;;  %v2106_v55 = vpop.f32.mrb[22].mxu0 }
 0x110   : > { %v728_v56 = vmul.f32 0.2, %v636_v52  ;;  %v639_v57 = vadd.f32 %v2106_v55, %v2408_v23  ;;  %v630_v58 = vpop.f32.mrb[23].mxu0  ;;  %2135 = vmatprep.mubr.msk.bf16.mxu1 %vm809_vm5, %v778_v51  ;;  %vm696_vm8 = vcmp.gt.f32.partialorder %v636_v52, 0.0 }
 0x111   : > { %v726_v59 = vmul.f32 0.2, %v628_v54  ;;  %v631_v60 = vadd.f32 %v2408_v23, %v630_v58  ;;  %2136 = vmatmul.mubr.msk.bf16.gmra.mrb[16].mxu1 %vm809_vm5, %v779_v48  ;;  %vm694_vm9 = vcmp.gt.f32.partialorder %v628_v54, 0.0  ;;  %v2482_v48 = vld [vmem:[%s2686_s4] ss:$0 sm:$0xff] }
 0x112   : > { %vm697_vm10 = vcmp.gt.f32.partialorder %v639_v57, 0.0  ;;  %v729_v61 = vmul.f32 0.2, %v639_v57  ;;  %v760_v63 = vsel %vm696_vm8, %v636_v52, %v728_v56 }
 0x113   : > { %vm695_vm11 = vcmp.gt.f32.partialorder %v631_v60, 0.0  ;;  %v727_v62 = vmul.f32 0.2, %v631_v60  ;;  %v758_v1 = vsel %vm694_vm9, %v628_v54, %v726_v59  ;;  %vm1170_vm9 = vcmask 523264  }
 0x114   : > { %v761_v0 = vsel %vm697_vm10, %v639_v57, %v729_v61 }
 0x115   : > { %v781_v2 = vpack.c.bf16 %v761_v0, %v760_v63  ;;  %v759_v3 = vsel %vm695_vm11, %v631_v60, %v727_v62  ;;  %v2109_v4 = vpop.f32.mrb[24].mxu0 }
 0x116   : > { %v780_v5 = vpack.c.bf16 %v759_v3, %v758_v1  ;;  %v652_v6 = vadd.f32 %v2109_v4, %v2408_v23  ;;  %v643_v7 = vpop.f32.mrb[25].mxu0 }
 0x117   : > { %v644_v8 = vadd.f32 %v2408_v23, %v643_v7  ;;  %v2110_v9 = vpop.f32.mrb[26].mxu0 }
 0x118   : > { %v732_v10 = vmul.f32 0.2, %v652_v6  ;;  %v655_v11 = vadd.f32 %v2110_v9, %v2408_v23  ;;  %v646_v12 = vpop.f32.mrb[27].mxu0  ;;  %2139 = vmatprep.mubr.msk.bf16.mxu1 %vm809_vm5, %v780_v5  ;;  %vm700_vm12 = vcmp.gt.f32.partialorder %v652_v6, 0.0 }
 0x119   : > { %v730_v13 = vmul.f32 0.2, %v644_v8  ;;  %v647_v14 = vadd.f32 %v2408_v23, %v646_v12  ;;  %2140 = vmatmul.mubr.msk.bf16.gmra.mrb[20].mxu1 %vm809_vm5, %v781_v2  ;;  %vm698_vm13 = vcmp.gt.f32.partialorder %v644_v8, 0.0 }
 0x11a   : > { %vm701_vm14 = vcmp.gt.f32.partialorder %v655_v11, 0.0  ;;  %v733_v15 = vmul.f32 0.2, %v655_v11  ;;  %v764_v17 = vsel %vm700_vm12, %v652_v6, %v732_v10 }
 0x11b   : > { %vm699_vm15 = vcmp.gt.f32.partialorder %v647_v14, 0.0  ;;  %v731_v16 = vmul.f32 0.2, %v647_v14  ;;  %v762_v19 = vsel %vm698_vm13, %v644_v8, %v730_v13 }
 0x11c   : > { %v765_v18 = vsel %vm701_vm14, %v655_v11, %v733_v15 }
 0x11d   : > { %v783_v20 = vpack.c.bf16 %v765_v18, %v764_v17  ;;  %v763_v21 = vsel %vm699_vm15, %v647_v14, %v731_v16  ;;  %v2113_v22 = vpop.f32.mrb[28].mxu0 }
 0x11e   : > { %v782_v24 = vpack.c.bf16 %v763_v21, %v762_v19  ;;  %v668_v25 = vadd.f32 %v2113_v22, %v2408_v23  ;;  %v659_v26 = vpop.f32.mrb[29].mxu0 }
 0x11f   : > { %v660_v27 = vadd.f32 %v2408_v23, %v659_v26  ;;  %v2114_v28 = vpop.f32.mrb[30].mxu0 }
 0x120   : > { %v736_v29 = vmul.f32 0.2, %v668_v25  ;;  %v671_v30 = vadd.f32 %v2114_v28, %v2408_v23  ;;  %v662_v31 = vpop.f32.mrb[31].mxu0  ;;  %2143 = vmatprep.mubr.msk.bf16.mxu1 %vm809_vm5, %v782_v24  ;;  %vm704_vm1 = vcmp.gt.f32.partialorder %v668_v25, 0.0 }
 0x121   : > { %v734_v32 = vmul.f32 0.2, %v660_v27  ;;  %v663_v33 = vadd.f32 %v2408_v23, %v662_v31  ;;  %2144 = vmatmul.mubr.msk.bf16.gmra.mrb[24].mxu1 %vm809_vm5, %v783_v20  ;;  %vm702_vm2 = vcmp.gt.f32.partialorder %v660_v27, 0.0  ;;  %v2270_v23 = vld [vmem:[%s2689_s7] sm:$0xff]  }
 0x122   : > { %vm705_vm3 = vcmp.gt.f32.partialorder %v671_v30, 0.0  ;;  %v737_v34 = vmul.f32 0.2, %v671_v30  ;;  %v768_v36 = vsel %vm704_vm1, %v668_v25, %v736_v29  ;;  %2191 = vmatprep.subr.bf16.mxu1 %v2270_v23 }
 0x123   : > { %vm703_vm4 = vcmp.gt.f32.partialorder %v663_v33, 0.0  ;;  %v735_v35 = vmul.f32 0.2, %v663_v33  ;;  %v766_v38 = vsel %vm702_vm2, %v660_v27, %v734_v32  ;;  %2192 = vmatpush3.bf16.msra.mxu1 %v2270_v23 }
 0x124   : > { %v769_v37 = vsel %vm705_vm3, %v671_v30, %v737_v34  ;;  %2193 = vmatprep.subr.bf16.mxu1 %v2271_v42 }
 0x125   : > { %v785_v39 = vpack.c.bf16 %v769_v37, %v768_v36  ;;  %v767_v40 = vsel %vm703_vm4, %v663_v33, %v735_v35 }
 0x126   : > { %v784_v41 = vpack.c.bf16 %v767_v40, %v766_v38 }
 0x127   : > { %2194 = vmatpush3.bf16.msra.mxu1 %v2271_v42 }
 0x128   : > { %2147 = vmatprep.mubr.msk.bf16.mxu1 %vm809_vm5, %v784_v41  ;;  %2195 = vmatprep.subr.bf16.mxu1 %v2272_v43 }
 0x129   : > { %2148 = vmatmul.mubr.msk.bf16.gmra.mrb[28].mxu1 %vm809_vm5, %v785_v39 }
 0x12b   : > { %2196 = vmatpush3.bf16.msra.mxu1 %v2272_v43 }
 0x12c   : > { %2197 = vmatprep.subr.bf16.mxu1 %v2273_v44 }
 0x12f   : > { %2198 = vmatpush3.bf16.msra.mxu1 %v2273_v44 }
 0x130   : > { %2199 = vmatprep.subr.bf16.mxu1 %v2274_v45 }
 0x133   : > { %2200 = vmatpush3.bf16.msra.mxu1 %v2274_v45 }
 0x134   : > { %2201 = vmatprep.subr.bf16.mxu1 %v2275_v46 }
 0x137   : > { %2202 = vmatpush3.bf16.msra.mxu1 %v2275_v46 }
 0x138   : > { %2203 = vmatprep.subr.bf16.mxu1 %v2276_v47 }
 0x13b   : > { %2204 = vmatpush3.bf16.msra.mxu1 %v2276_v47 }
 0x1c4   : > { %v2121_v49 = vpop.f32.mrb[0].mxu1 }
 0x1c5   : > { %v901_v50 = vadd.f32 %v2121_v49, %v2482_v48  ;;  %v892_v51 = vpop.f32.mrb[1].mxu1 }
 0x1c6   : > { %v893_v52 = vadd.f32 %v2482_v48, %v892_v51  ;;  %v2122_v53 = vpop.f32.mrb[2].mxu1 }
 0x1c7   : > { %v1053_v54 = vmul.f32 0.2, %v901_v50  ;;  %v904_v55 = vadd.f32 %v2122_v53, %v2482_v48  ;;  %v895_v56 = vpop.f32.mrb[3].mxu1  ;;  %vm1021_vm5 = vcmp.gt.f32.partialorder %v901_v50, 0.0 }
 0x1c8   : > { %v1051_v57 = vmul.f32 0.2, %v893_v52  ;;  %v896_v58 = vadd.f32 %v2482_v48, %v895_v56  ;;  %vm1019_vm6 = vcmp.gt.f32.partialorder %v893_v52, 0.0 }
 0x1c9   : > { %vm1022_vm7 = vcmp.gt.f32.partialorder %v904_v55, 0.0  ;;  %v1054_v59 = vmul.f32 0.2, %v904_v55  ;;  %v1085_v61 = vsel %vm1021_vm5, %v901_v50, %v1053_v54 }
 0x1ca   : > { %vm1020_vm8 = vcmp.gt.f32.partialorder %v896_v58, 0.0  ;;  %v1052_v60 = vmul.f32 0.2, %v896_v58  ;;  %v1083_v63 = vsel %vm1019_vm6, %v893_v52, %v1051_v57 }
 0x1cb   : > { %v1086_v62 = vsel %vm1022_vm7, %v904_v55, %v1054_v59 }
 0x1cc   : > { %v1116_v0 = vpack.c.bf16 %v1086_v62, %v1085_v61  ;;  %v1084_v1 = vsel %vm1020_vm8, %v896_v58, %v1052_v60  ;;  %v2125_v2 = vpop.f32.mrb[4].mxu1 }
 0x1cd   : > { %v1115_v3 = vpack.c.bf16 %v1084_v1, %v1083_v63  ;;  %v917_v4 = vadd.f32 %v2125_v2, %v2482_v48  ;;  %v908_v5 = vpop.f32.mrb[5].mxu1 }
 0x1ce   : > { %v909_v6 = vadd.f32 %v2482_v48, %v908_v5  ;;  %v2126_v7 = vpop.f32.mrb[6].mxu1 }
 0x1cf   : > { %v1057_v8 = vmul.f32 0.2, %v917_v4  ;;  %v920_v9 = vadd.f32 %v2126_v7, %v2482_v48  ;;  %v911_v10 = vpop.f32.mrb[7].mxu1  ;;  %2159 = vmatprep.mubr.msk.bf16.mxu0 %vm1170_vm9, %v1115_v3  ;;  %vm1025_vm10 = vcmp.gt.f32.partialorder %v917_v4, 0.0 }
 0x1d0   : > { %v1055_v11 = vmul.f32 0.2, %v909_v6  ;;  %v912_v12 = vadd.f32 %v2482_v48, %v911_v10  ;;  %2160 = vmatmul.mubr.msk.bf16.vlgmr.msra.gmra.mrb[32].mxu0 %vm1170_vm9, %v1116_v0  ;;  %vm1023_vm11 = vcmp.gt.f32.partialorder %v909_v6, 0.0 }
 0x1d1   : > { %vm1026_vm12 = vcmp.gt.f32.partialorder %v920_v9, 0.0  ;;  %v1058_v13 = vmul.f32 0.2, %v920_v9  ;;  %v1089_v15 = vsel %vm1025_vm10, %v917_v4, %v1057_v8 }
 0x1d2   : > { %vm1024_vm13 = vcmp.gt.f32.partialorder %v912_v12, 0.0  ;;  %v1056_v14 = vmul.f32 0.2, %v912_v12  ;;  %v1087_v17 = vsel %vm1023_vm11, %v909_v6, %v1055_v11 }
 0x1d3   : > { %v1090_v16 = vsel %vm1026_vm12, %v920_v9, %v1058_v13 }
 0x1d4   : > { %v1118_v18 = vpack.c.bf16 %v1090_v16, %v1089_v15  ;;  %v1088_v19 = vsel %vm1024_vm13, %v912_v12, %v1056_v14  ;;  %v2129_v20 = vpop.f32.mrb[8].mxu1 }
 0x1d5   : > { %v1117_v21 = vpack.c.bf16 %v1088_v19, %v1087_v17  ;;  %v933_v22 = vadd.f32 %v2129_v20, %v2482_v48  ;;  %v924_v24 = vpop.f32.mrb[9].mxu1 }
 0x1d6   : > { %v925_v25 = vadd.f32 %v2482_v48, %v924_v24  ;;  %v2130_v26 = vpop.f32.mrb[10].mxu1 }
 0x1d7   : > { %v1061_v27 = vmul.f32 0.2, %v933_v22  ;;  %v936_v28 = vadd.f32 %v2130_v26, %v2482_v48  ;;  %v927_v29 = vpop.f32.mrb[11].mxu1  ;;  %2163 = vmatprep.mubr.msk.bf16.mxu0 %vm1170_vm9, %v1117_v21  ;;  %vm1029_vm14 = vcmp.gt.f32.partialorder %v933_v22, 0.0 }
 0x1d8   : > { %v1059_v30 = vmul.f32 0.2, %v925_v25  ;;  %v928_v31 = vadd.f32 %v2482_v48, %v927_v29  ;;  %2164 = vmatmul.mubr.msk.bf16.gmra.mrb[36].mxu0 %vm1170_vm9, %v1118_v18  ;;  %vm1027_vm15 = vcmp.gt.f32.partialorder %v925_v25, 0.0 }
 0x1d9   : > { %vm1030_vm1 = vcmp.gt.f32.partialorder %v936_v28, 0.0  ;;  %v1062_v32 = vmul.f32 0.2, %v936_v28  ;;  %v1093_v34 = vsel %vm1029_vm14, %v933_v22, %v1061_v27 }
 0x1da   : > { %vm1028_vm2 = vcmp.gt.f32.partialorder %v928_v31, 0.0  ;;  %v1060_v33 = vmul.f32 0.2, %v928_v31  ;;  %v1091_v36 = vsel %vm1027_vm15, %v925_v25, %v1059_v30 }
 0x1db   : > { %v1094_v35 = vsel %vm1030_vm1, %v936_v28, %v1062_v32 }
 0x1dc   : > { %v1120_v37 = vpack.c.bf16 %v1094_v35, %v1093_v34  ;;  %v1092_v38 = vsel %vm1028_vm2, %v928_v31, %v1060_v33  ;;  %v2133_v39 = vpop.f32.mrb[12].mxu1 }
 0x1dd   : > { %v1119_v40 = vpack.c.bf16 %v1092_v38, %v1091_v36  ;;  %v949_v41 = vadd.f32 %v2133_v39, %v2482_v48  ;;  %v940_v23 = vpop.f32.mrb[13].mxu1 }
 0x1de   : > { %v941_v42 = vadd.f32 %v2482_v48, %v940_v23  ;;  %v2134_v43 = vpop.f32.mrb[14].mxu1 }
 0x1df   : > { %v1065_v44 = vmul.f32 0.2, %v949_v41  ;;  %v952_v45 = vadd.f32 %v2134_v43, %v2482_v48  ;;  %v943_v46 = vpop.f32.mrb[15].mxu1  ;;  %2167 = vmatprep.mubr.msk.bf16.mxu0 %vm1170_vm9, %v1119_v40  ;;  %vm1033_vm3 = vcmp.gt.f32.partialorder %v949_v41, 0.0 }
 0x1e0   : > { %v1063_v47 = vmul.f32 0.2, %v941_v42  ;;  %v944_v49 = vadd.f32 %v2482_v48, %v943_v46  ;;  %2168 = vmatmul.mubr.msk.bf16.gmra.mrb[40].mxu0 %vm1170_vm9, %v1120_v37  ;;  %vm1031_vm4 = vcmp.gt.f32.partialorder %v941_v42, 0.0 }
 0x1e1   : > { %vm1034_vm5 = vcmp.gt.f32.partialorder %v952_v45, 0.0  ;;  %v1066_v50 = vmul.f32 0.2, %v952_v45  ;;  %v1097_v52 = vsel %vm1033_vm3, %v949_v41, %v1065_v44 }
 0x1e2   : > { %vm1032_vm6 = vcmp.gt.f32.partialorder %v944_v49, 0.0  ;;  %v1064_v51 = vmul.f32 0.2, %v944_v49  ;;  %v1095_v54 = vsel %vm1031_vm4, %v941_v42, %v1063_v47 }
 0x1e3   : > { %v1098_v53 = vsel %vm1034_vm5, %v952_v45, %v1066_v50 }
 0x1e4   : > { %v1122_v55 = vpack.c.bf16 %v1098_v53, %v1097_v52  ;;  %v1096_v56 = vsel %vm1032_vm6, %v944_v49, %v1064_v51  ;;  %v2137_v57 = vpop.f32.mrb[16].mxu1 }
 0x1e5   : > { %v1121_v58 = vpack.c.bf16 %v1096_v56, %v1095_v54  ;;  %v965_v59 = vadd.f32 %v2137_v57, %v2482_v48  ;;  %v956_v60 = vpop.f32.mrb[17].mxu1 }
 0x1e6   : > { %v957_v61 = vadd.f32 %v2482_v48, %v956_v60  ;;  %v2138_v62 = vpop.f32.mrb[18].mxu1 }
 0x1e7   : > { %v1069_v63 = vmul.f32 0.2, %v965_v59  ;;  %v968_v0 = vadd.f32 %v2138_v62, %v2482_v48  ;;  %v959_v1 = vpop.f32.mrb[19].mxu1  ;;  %2171 = vmatprep.mubr.msk.bf16.mxu0 %vm1170_vm9, %v1121_v58  ;;  %vm1037_vm7 = vcmp.gt.f32.partialorder %v965_v59, 0.0 }
 0x1e8   : > { %v1067_v2 = vmul.f32 0.2, %v957_v61  ;;  %v960_v3 = vadd.f32 %v2482_v48, %v959_v1  ;;  %2172 = vmatmul.mubr.msk.bf16.gmra.mrb[44].mxu0 %vm1170_vm9, %v1122_v55  ;;  %vm1035_vm8 = vcmp.gt.f32.partialorder %v957_v61, 0.0 }
 0x1e9   : > { %vm1038_vm10 = vcmp.gt.f32.partialorder %v968_v0, 0.0  ;;  %v1070_v4 = vmul.f32 0.2, %v968_v0  ;;  %v1101_v6 = vsel %vm1037_vm7, %v965_v59, %v1069_v63 }
 0x1ea   : > { %vm1036_vm11 = vcmp.gt.f32.partialorder %v960_v3, 0.0  ;;  %v1068_v5 = vmul.f32 0.2, %v960_v3  ;;  %v1099_v8 = vsel %vm1035_vm8, %v957_v61, %v1067_v2 }
 0x1eb   : > { %v1102_v7 = vsel %vm1038_vm10, %v968_v0, %v1070_v4 }
 0x1ec   : > { %v1124_v9 = vpack.c.bf16 %v1102_v7, %v1101_v6  ;;  %v1100_v10 = vsel %vm1036_vm11, %v960_v3, %v1068_v5  ;;  %v2141_v11 = vpop.f32.mrb[20].mxu1  ;;  %v2538_v3 = vld [vmem:[%s2688_s6] ss:$0 sm:$0xff] }
 0x1ed   : > { %v1123_v12 = vpack.c.bf16 %v1100_v10, %v1099_v8  ;;  %v981_v13 = vadd.f32 %v2141_v11, %v2482_v48  ;;  %v972_v14 = vpop.f32.mrb[21].mxu1 }
 0x1ee   : > { %v973_v15 = vadd.f32 %v2482_v48, %v972_v14  ;;  %v2142_v16 = vpop.f32.mrb[22].mxu1 }
 0x1ef   : > { %v1073_v17 = vmul.f32 0.2, %v981_v13  ;;  %v984_v18 = vadd.f32 %v2142_v16, %v2482_v48  ;;  %v975_v19 = vpop.f32.mrb[23].mxu1  ;;  %2175 = vmatprep.mubr.msk.bf16.mxu0 %vm1170_vm9, %v1123_v12  ;;  %vm1041_vm12 = vcmp.gt.f32.partialorder %v981_v13, 0.0 }
 0x1f0   : > { %v1071_v20 = vmul.f32 0.2, %v973_v15  ;;  %v976_v21 = vadd.f32 %v2482_v48, %v975_v19  ;;  %2176 = vmatmul.mubr.msk.bf16.gmra.mrb[48].mxu0 %vm1170_vm9, %v1124_v9  ;;  %vm1039_vm13 = vcmp.gt.f32.partialorder %v973_v15, 0.0 }
 0x1f1   : > { %vm1042_vm14 = vcmp.gt.f32.partialorder %v984_v18, 0.0  ;;  %v1074_v22 = vmul.f32 0.2, %v984_v18  ;;  %v1105_v25 = vsel %vm1041_vm12, %v981_v13, %v1073_v17 }
 0x1f2   : > { %vm1040_vm15 = vcmp.gt.f32.partialorder %v976_v21, 0.0  ;;  %v1072_v24 = vmul.f32 0.2, %v976_v21  ;;  %v1103_v27 = vsel %vm1039_vm13, %v973_v15, %v1071_v20 }
 0x1f3   : > { %v1106_v26 = vsel %vm1042_vm14, %v984_v18, %v1074_v22 }
 0x1f4   : > { %v1126_v28 = vpack.c.bf16 %v1106_v26, %v1105_v25  ;;  %v1104_v29 = vsel %vm1040_vm15, %v976_v21, %v1072_v24  ;;  %v2145_v30 = vpop.f32.mrb[24].mxu1 }
 0x1f5   : > { %v1125_v31 = vpack.c.bf16 %v1104_v29, %v1103_v27  ;;  %v997_v32 = vadd.f32 %v2145_v30, %v2482_v48  ;;  %v988_v33 = vpop.f32.mrb[25].mxu1 }
 0x1f6   : > { %v989_v34 = vadd.f32 %v2482_v48, %v988_v33  ;;  %v2146_v35 = vpop.f32.mrb[26].mxu1 }
 0x1f7   : > { %v1077_v36 = vmul.f32 0.2, %v997_v32  ;;  %v1000_v37 = vadd.f32 %v2146_v35, %v2482_v48  ;;  %v991_v38 = vpop.f32.mrb[27].mxu1  ;;  %2179 = vmatprep.mubr.msk.bf16.mxu0 %vm1170_vm9, %v1125_v31  ;;  %vm1045_vm1 = vcmp.gt.f32.partialorder %v997_v32, 0.0 }
 0x1f8   : > { %v1075_v39 = vmul.f32 0.2, %v989_v34  ;;  %v992_v40 = vadd.f32 %v2482_v48, %v991_v38  ;;  %2180 = vmatmul.mubr.msk.bf16.gmra.mrb[52].mxu0 %vm1170_vm9, %v1126_v28  ;;  %vm1043_vm2 = vcmp.gt.f32.partialorder %v989_v34, 0.0 }
 0x1f9   : > { %vm1046_vm3 = vcmp.gt.f32.partialorder %v1000_v37, 0.0  ;;  %v1078_v41 = vmul.f32 0.2, %v1000_v37  ;;  %v1109_v42 = vsel %vm1045_vm1, %v997_v32, %v1077_v36 }
 0x1fa   : > { %vm1044_vm4 = vcmp.gt.f32.partialorder %v992_v40, 0.0  ;;  %v1076_v23 = vmul.f32 0.2, %v992_v40  ;;  %v1107_v44 = vsel %vm1043_vm2, %v989_v34, %v1075_v39 }
 0x1fb   : > { %v1110_v43 = vsel %vm1046_vm3, %v1000_v37, %v1078_v41 }
 0x1fc   : > { %v1128_v45 = vpack.c.bf16 %v1110_v43, %v1109_v42  ;;  %v1108_v46 = vsel %vm1044_vm4, %v992_v40, %v1076_v23  ;;  %v2149_v47 = vpop.f32.mrb[28].mxu1 }
 0x1fd   : > { %v1127_v49 = vpack.c.bf16 %v1108_v46, %v1107_v44  ;;  %v1013_v50 = vadd.f32 %v2149_v47, %v2482_v48  ;;  %v1004_v51 = vpop.f32.mrb[29].mxu1 }
 0x1fe   : > { %v1005_v52 = vadd.f32 %v2482_v48, %v1004_v51  ;;  %v2150_v53 = vpop.f32.mrb[30].mxu1 }
 0x1ff   : > { %v1081_v54 = vmul.f32 0.2, %v1013_v50  ;;  %v1016_v55 = vadd.f32 %v2150_v53, %v2482_v48  ;;  %v1007_v56 = vpop.f32.mrb[31].mxu1  ;;  %2183 = vmatprep.mubr.msk.bf16.mxu0 %vm1170_vm9, %v1127_v49  ;;  %vm1049_vm5 = vcmp.gt.f32.partialorder %v1013_v50, 0.0 }
 0x200   : > { %v1079_v57 = vmul.f32 0.2, %v1005_v52  ;;  %v1008_v58 = vadd.f32 %v2482_v48, %v1007_v56  ;;  %2184 = vmatmul.mubr.msk.bf16.gmra.mrb[56].mxu0 %vm1170_vm9, %v1128_v45  ;;  %vm1047_vm6 = vcmp.gt.f32.partialorder %v1005_v52, 0.0  ;;  %v2277_v48 = vld [vmem:[%s2689_s7 + $0x38] sm:$0xff]  }
 0x201   : > { %vm1050_vm7 = vcmp.gt.f32.partialorder %v1016_v55, 0.0  ;;  %v1082_v59 = vmul.f32 0.2, %v1016_v55  ;;  %v1113_v61 = vsel %vm1049_vm5, %v1013_v50, %v1081_v54  ;;  %2205 = vmatprep.subr.bf16.mxu1 %v2277_v48 }
 0x202   : > { %vm1048_vm8 = vcmp.gt.f32.partialorder %v1008_v58, 0.0  ;;  %v1080_v60 = vmul.f32 0.2, %v1008_v58  ;;  %v1111_v63 = vsel %vm1047_vm6, %v1005_v52, %v1079_v57  ;;  %2206 = vmatpush3.bf16.msra.mxu1 %v2277_v48 }
 0x203   : > { %v1114_v62 = vsel %vm1050_vm7, %v1016_v55, %v1082_v59 }
 0x204   : > { %v1130_v0 = vpack.c.bf16 %v1114_v62, %v1113_v61  ;;  %v1112_v1 = vsel %vm1048_vm8, %v1008_v58, %v1080_v60 }
 0x205   : > { %v1129_v2 = vpack.c.bf16 %v1112_v1, %v1111_v63 }
 0x207   : > { %2187 = vmatprep.mubr.msk.bf16.mxu0 %vm1170_vm9, %v1129_v2 }
 0x208   : > { %2188 = vmatmul.mubr.msk.bf16.gmra.mrb[60].mxu0 %vm1170_vm9, %v1130_v0 }
 0x2a3   : > { %v2161_v4 = vpop.f32.mrb[32].mxu0 }
 0x2a4   : > { %v1262_v5 = vadd.f32 %v2161_v4, %v2538_v3  ;;  %v1253_v6 = vpop.f32.mrb[33].mxu0 }
 0x2a5   : > { %v1254_v7 = vadd.f32 %v2538_v3, %v1253_v6  ;;  %v2162_v8 = vpop.f32.mrb[34].mxu0 }
 0x2a6   : > { %v1414_v9 = vmul.f32 0.2, %v1262_v5  ;;  %v1265_v10 = vadd.f32 %v2162_v8, %v2538_v3  ;;  %v1256_v11 = vpop.f32.mrb[35].mxu0  ;;  %vm1382_vm9 = vcmp.gt.f32.partialorder %v1262_v5, 0.0 }
 0x2a7   : > { %v1412_v12 = vmul.f32 0.2, %v1254_v7  ;;  %v1257_v13 = vadd.f32 %v2538_v3, %v1256_v11  ;;  %vm1380_vm10 = vcmp.gt.f32.partialorder %v1254_v7, 0.0 }
 0x2a8   : > { %vm1383_vm11 = vcmp.gt.f32.partialorder %v1265_v10, 0.0  ;;  %v1415_v14 = vmul.f32 0.2, %v1265_v10  ;;  %v1446_v16 = vsel %vm1382_vm9, %v1262_v5, %v1414_v9 }
 0x2a9   : > { %vm1381_vm12 = vcmp.gt.f32.partialorder %v1257_v13, 0.0  ;;  %v1413_v15 = vmul.f32 0.2, %v1257_v13  ;;  %v1444_v20 = vsel %vm1380_vm10, %v1254_v7, %v1412_v12 }
 0x2aa   : > { %v1447_v17 = vsel %vm1383_vm11, %v1265_v10, %v1415_v14 }
 0x2ab   : > { %v1477_v18 = vpack.c.bf16 %v1447_v17, %v1446_v16  ;;  %v2165_v19 = vpop.f32.mrb[36].mxu0  ;;  %v1445_v21 = vsel %vm1381_vm12, %v1257_v13, %v1413_v15 }
 0x2ac   : > { %v1278_v22 = vadd.f32 %v2165_v19, %v2538_v3  ;;  %v1269_v24 = vpop.f32.mrb[37].mxu0  ;;  %v1476_v25 = vpack.c.bf16 %v1445_v21, %v1444_v20 }
 0x2ad   : > { %v1270_v26 = vadd.f32 %v2538_v3, %v1269_v24  ;;  %v2166_v27 = vpop.f32.mrb[38].mxu0 }
 0x2ae   : > { %v1418_v28 = vmul.f32 0.2, %v1278_v22  ;;  %v1281_v29 = vadd.f32 %v2166_v27, %v2538_v3  ;;  %v1272_v30 = vpop.f32.mrb[39].mxu0  ;;  %2207 = vmatprep.mubr.bf16.mxu1 %v1476_v25  ;;  %vm1386_vm13 = vcmp.gt.f32.partialorder %v1278_v22, 0.0 }
 0x2af   : > { %v1416_v31 = vmul.f32 0.2, %v1270_v26  ;;  %v1273_v32 = vadd.f32 %v2538_v3, %v1272_v30  ;;  %2208 = vmatmul.mubr.bf16.vlgmr.msra.gmra.mrb[32].mxu1 %v1477_v18  ;;  %vm1384_vm14 = vcmp.gt.f32.partialorder %v1270_v26, 0.0 }
 0x2b0   : > { %vm1387_vm15 = vcmp.gt.f32.partialorder %v1281_v29, 0.0  ;;  %v1419_v33 = vmul.f32 0.2, %v1281_v29  ;;  %v1450_v35 = vsel %vm1386_vm13, %v1278_v22, %v1418_v28 }
 0x2b1   : > { %vm1385_vm1 = vcmp.gt.f32.partialorder %v1273_v32, 0.0  ;;  %v1417_v34 = vmul.f32 0.2, %v1273_v32  ;;  %v1448_v38 = vsel %vm1384_vm14, %v1270_v26, %v1416_v31 }
 0x2b2   : > { %v1451_v36 = vsel %vm1387_vm15, %v1281_v29, %v1419_v33 }
 0x2b3   : > { %v2169_v37 = vpop.f32.mrb[40].mxu0  ;;  %v1449_v39 = vsel %vm1385_vm1, %v1273_v32, %v1417_v34  ;;  %v1479_v40 = vpack.c.bf16 %v1451_v36, %v1450_v35 }
 0x2b4   : > { %v1294_v41 = vadd.f32 %v2169_v37, %v2538_v3  ;;  %v1285_v23 = vpop.f32.mrb[41].mxu0  ;;  %v1478_v42 = vpack.c.bf16 %v1449_v39, %v1448_v38 }
 0x2b5   : > { %v1286_v43 = vadd.f32 %v2538_v3, %v1285_v23  ;;  %v2170_v44 = vpop.f32.mrb[42].mxu0 }
 0x2b6   : > { %v1422_v45 = vmul.f32 0.2, %v1294_v41  ;;  %v1297_v46 = vadd.f32 %v2170_v44, %v2538_v3  ;;  %v1288_v47 = vpop.f32.mrb[43].mxu0  ;;  %2211 = vmatprep.mubr.bf16.mxu1 %v1478_v42  ;;  %vm1390_vm2 = vcmp.gt.f32.partialorder %v1294_v41, 0.0 }
 0x2b7   : > { %v1420_v49 = vmul.f32 0.2, %v1286_v43  ;;  %v1289_v50 = vadd.f32 %v2538_v3, %v1288_v47  ;;  %2212 = vmatmul.mubr.bf16.gmra.mrb[36].mxu1 %v1479_v40  ;;  %vm1388_vm3 = vcmp.gt.f32.partialorder %v1286_v43, 0.0 }
 0x2b8   : > { %vm1391_vm4 = vcmp.gt.f32.partialorder %v1297_v46, 0.0  ;;  %v1423_v51 = vmul.f32 0.2, %v1297_v46  ;;  %v1454_v53 = vsel %vm1390_vm2, %v1294_v41, %v1422_v45 }
 0x2b9   : > { %vm1389_vm5 = vcmp.gt.f32.partialorder %v1289_v50, 0.0  ;;  %v1421_v52 = vmul.f32 0.2, %v1289_v50  ;;  %v1452_v56 = vsel %vm1388_vm3, %v1286_v43, %v1420_v49 }
 0x2ba   : > { %v1455_v54 = vsel %vm1391_vm4, %v1297_v46, %v1423_v51 }
 0x2bb   : > { %v2173_v55 = vpop.f32.mrb[44].mxu0  ;;  %v1453_v57 = vsel %vm1389_vm5, %v1289_v50, %v1421_v52  ;;  %v1481_v58 = vpack.c.bf16 %v1455_v54, %v1454_v53 }
 0x2bc   : > { %v1310_v59 = vadd.f32 %v2173_v55, %v2538_v3  ;;  %v1301_v60 = vpop.f32.mrb[45].mxu0  ;;  %v1480_v61 = vpack.c.bf16 %v1453_v57, %v1452_v56 }
 0x2bd   : > { %v1302_v62 = vadd.f32 %v2538_v3, %v1301_v60  ;;  %v2174_v63 = vpop.f32.mrb[46].mxu0 }
 0x2be   : > { %v1426_v0 = vmul.f32 0.2, %v1310_v59  ;;  %v1313_v1 = vadd.f32 %v2174_v63, %v2538_v3  ;;  %v1304_v2 = vpop.f32.mrb[47].mxu0  ;;  %2215 = vmatprep.mubr.bf16.mxu1 %v1480_v61  ;;  %vm1394_vm6 = vcmp.gt.f32.partialorder %v1310_v59, 0.0 }
 0x2bf   : > { %v1424_v48 = vmul.f32 0.2, %v1302_v62  ;;  %v1305_v4 = vadd.f32 %v2538_v3, %v1304_v2  ;;  %2216 = vmatmul.mubr.bf16.gmra.mrb[40].mxu1 %v1481_v58  ;;  %vm1392_vm7 = vcmp.gt.f32.partialorder %v1302_v62, 0.0 }
 0x2c0   : > { %vm1395_vm8 = vcmp.gt.f32.partialorder %v1313_v1, 0.0  ;;  %v1427_v5 = vmul.f32 0.2, %v1313_v1  ;;  %v1458_v7 = vsel %vm1394_vm6, %v1310_v59, %v1426_v0 }
 0x2c1   : > { %vm1393_vm9 = vcmp.gt.f32.partialorder %v1305_v4, 0.0  ;;  %v1425_v6 = vmul.f32 0.2, %v1305_v4  ;;  %v1456_v10 = vsel %vm1392_vm7, %v1302_v62, %v1424_v48 }
 0x2c2   : > { %v1459_v8 = vsel %vm1395_vm8, %v1313_v1, %v1427_v5 }
 0x2c3   : > { %v2177_v9 = vpop.f32.mrb[48].mxu0  ;;  %v1457_v11 = vsel %vm1393_vm9, %v1305_v4, %v1425_v6  ;;  %v1483_v12 = vpack.c.bf16 %v1459_v8, %v1458_v7 }
 0x2c4   : > { %v1326_v13 = vadd.f32 %v2177_v9, %v2538_v3  ;;  %v1317_v14 = vpop.f32.mrb[49].mxu0  ;;  %v1482_v15 = vpack.c.bf16 %v1457_v11, %v1456_v10 }
 0x2c5   : > { %v1318_v16 = vadd.f32 %v2538_v3, %v1317_v14  ;;  %v2178_v17 = vpop.f32.mrb[50].mxu0 }
 0x2c6   : > { %v1430_v18 = vmul.f32 0.2, %v1326_v13  ;;  %v1329_v19 = vadd.f32 %v2178_v17, %v2538_v3  ;;  %v1320_v20 = vpop.f32.mrb[51].mxu0  ;;  %2219 = vmatprep.mubr.bf16.mxu1 %v1482_v15  ;;  %vm1398_vm10 = vcmp.gt.f32.partialorder %v1326_v13, 0.0 }
 0x2c7   : > { %v1428_v21 = vmul.f32 0.2, %v1318_v16  ;;  %v1321_v22 = vadd.f32 %v2538_v3, %v1320_v20  ;;  %2220 = vmatmul.mubr.bf16.gmra.mrb[44].mxu1 %v1483_v12  ;;  %vm1396_vm11 = vcmp.gt.f32.partialorder %v1318_v16, 0.0 }
 0x2c8   : > { %vm1399_vm12 = vcmp.gt.f32.partialorder %v1329_v19, 0.0  ;;  %v1431_v24 = vmul.f32 0.2, %v1329_v19  ;;  %v1462_v26 = vsel %vm1398_vm10, %v1326_v13, %v1430_v18 }
 0x2c9   : > { %vm1397_vm13 = vcmp.gt.f32.partialorder %v1321_v22, 0.0  ;;  %v1429_v25 = vmul.f32 0.2, %v1321_v22  ;;  %v1460_v29 = vsel %vm1396_vm11, %v1318_v16, %v1428_v21 }
 0x2ca   : > { %v1463_v27 = vsel %vm1399_vm12, %v1329_v19, %v1431_v24 }
 0x2cb   : > { %v2181_v28 = vpop.f32.mrb[52].mxu0  ;;  %v1461_v30 = vsel %vm1397_vm13, %v1321_v22, %v1429_v25  ;;  %v1485_v31 = vpack.c.bf16 %v1463_v27, %v1462_v26  ;;  %v2575_v22 = vld [vmem:[%s2690_s8] ss:$0 sm:$0xff] }
 0x2cc   : > { %v1342_v32 = vadd.f32 %v2181_v28, %v2538_v3  ;;  %v1333_v33 = vpop.f32.mrb[53].mxu0  ;;  %v1484_v34 = vpack.c.bf16 %v1461_v30, %v1460_v29 }
 0x2cd   : > { %v1334_v35 = vadd.f32 %v2538_v3, %v1333_v33  ;;  %v2182_v36 = vpop.f32.mrb[54].mxu0 }
 0x2ce   : > { %v1434_v37 = vmul.f32 0.2, %v1342_v32  ;;  %v1345_v38 = vadd.f32 %v2182_v36, %v2538_v3  ;;  %v1336_v39 = vpop.f32.mrb[55].mxu0  ;;  %2223 = vmatprep.mubr.bf16.mxu1 %v1484_v34  ;;  %vm1402_vm14 = vcmp.gt.f32.partialorder %v1342_v32, 0.0 }
 0x2cf   : > { %v1432_v40 = vmul.f32 0.2, %v1334_v35  ;;  %v1337_v41 = vadd.f32 %v2538_v3, %v1336_v39  ;;  %2224 = vmatmul.mubr.bf16.gmra.mrb[48].mxu1 %v1485_v31  ;;  %vm1400_vm15 = vcmp.gt.f32.partialorder %v1334_v35, 0.0 }
 0x2d0   : > { %vm1403_vm1 = vcmp.gt.f32.partialorder %v1345_v38, 0.0  ;;  %v1435_v23 = vmul.f32 0.2, %v1345_v38  ;;  %v1466_v43 = vsel %vm1402_vm14, %v1342_v32, %v1434_v37 }
 0x2d1   : > { %vm1401_vm2 = vcmp.gt.f32.partialorder %v1337_v41, 0.0  ;;  %v1433_v42 = vmul.f32 0.2, %v1337_v41  ;;  %v1464_v46 = vsel %vm1400_vm15, %v1334_v35, %v1432_v40 }
 0x2d2   : > { %v1467_v44 = vsel %vm1403_vm1, %v1345_v38, %v1435_v23 }
 0x2d3   : > { %v2185_v45 = vpop.f32.mrb[56].mxu0  ;;  %v1465_v47 = vsel %vm1401_vm2, %v1337_v41, %v1433_v42  ;;  %v1487_v49 = vpack.c.bf16 %v1467_v44, %v1466_v43 }
 0x2d4   : > { %v1358_v50 = vadd.f32 %v2185_v45, %v2538_v3  ;;  %v1349_v51 = vpop.f32.mrb[57].mxu0  ;;  %v1486_v52 = vpack.c.bf16 %v1465_v47, %v1464_v46 }
 0x2d5   : > { %v1350_v53 = vadd.f32 %v2538_v3, %v1349_v51  ;;  %v2186_v54 = vpop.f32.mrb[58].mxu0 }
 0x2d6   : > { %v1438_v55 = vmul.f32 0.2, %v1358_v50  ;;  %v1361_v56 = vadd.f32 %v2186_v54, %v2538_v3  ;;  %v1352_v57 = vpop.f32.mrb[59].mxu0  ;;  %2227 = vmatprep.mubr.bf16.mxu1 %v1486_v52  ;;  %vm1406_vm3 = vcmp.gt.f32.partialorder %v1358_v50, 0.0 }
 0x2d7   : > { %v1436_v58 = vmul.f32 0.2, %v1350_v53  ;;  %v1353_v59 = vadd.f32 %v2538_v3, %v1352_v57  ;;  %2228 = vmatmul.mubr.bf16.gmra.mrb[52].mxu1 %v1487_v49  ;;  %vm1404_vm4 = vcmp.gt.f32.partialorder %v1350_v53, 0.0 }
 0x2d8   : > { %vm1407_vm5 = vcmp.gt.f32.partialorder %v1361_v56, 0.0  ;;  %v1439_v60 = vmul.f32 0.2, %v1361_v56  ;;  %v1470_v62 = vsel %vm1406_vm3, %v1358_v50, %v1438_v55 }
 0x2d9   : > { %vm1405_vm6 = vcmp.gt.f32.partialorder %v1353_v59, 0.0  ;;  %v1437_v61 = vmul.f32 0.2, %v1353_v59  ;;  %v1468_v1 = vsel %vm1404_vm4, %v1350_v53, %v1436_v58 }
 0x2da   : > { %v1471_v63 = vsel %vm1407_vm5, %v1361_v56, %v1439_v60 }
 0x2db   : > { %v2189_v0 = vpop.f32.mrb[60].mxu0  ;;  %v1469_v2 = vsel %vm1405_vm6, %v1353_v59, %v1437_v61  ;;  %v1489_v48 = vpack.c.bf16 %v1471_v63, %v1470_v62 }
 0x2dc   : > { %v1374_v4 = vadd.f32 %v2189_v0, %v2538_v3  ;;  %v1365_v5 = vpop.f32.mrb[61].mxu0  ;;  %v1488_v6 = vpack.c.bf16 %v1469_v2, %v1468_v1 }
 0x2dd   : > { %v1366_v7 = vadd.f32 %v2538_v3, %v1365_v5  ;;  %v2190_v8 = vpop.f32.mrb[62].mxu0 }
 0x2de   : > { %v1442_v9 = vmul.f32 0.2, %v1374_v4  ;;  %v1377_v10 = vadd.f32 %v2190_v8, %v2538_v3  ;;  %v1368_v11 = vpop.f32.mrb[63].mxu0  ;;  %2231 = vmatprep.mubr.bf16.mxu1 %v1488_v6  ;;  %vm1410_vm7 = vcmp.gt.f32.partialorder %v1374_v4, 0.0 }
 0x2df   : > { %v1440_v12 = vmul.f32 0.2, %v1366_v7  ;;  %v1369_v13 = vadd.f32 %v2538_v3, %v1368_v11  ;;  %2232 = vmatmul.mubr.bf16.gmra.mrb[56].mxu1 %v1489_v48  ;;  %vm1408_vm8 = vcmp.gt.f32.partialorder %v1366_v7, 0.0 }
 0x2e0   : > { %vm1411_vm9 = vcmp.gt.f32.partialorder %v1377_v10, 0.0  ;;  %v1443_v14 = vmul.f32 0.2, %v1377_v10  ;;  %v1474_v16 = vsel %vm1410_vm7, %v1374_v4, %v1442_v9 }
 0x2e1   : > { %vm1409_vm10 = vcmp.gt.f32.partialorder %v1369_v13, 0.0  ;;  %v1441_v15 = vmul.f32 0.2, %v1369_v13  ;;  %v1472_v18 = vsel %vm1408_vm8, %v1366_v7, %v1440_v12 }
 0x2e2   : > { %v1475_v17 = vsel %vm1411_vm9, %v1377_v10, %v1443_v14 }
 0x2e3   : > { %v1473_v19 = vsel %vm1409_vm10, %v1369_v13, %v1441_v15  ;;  %v1491_v20 = vpack.c.bf16 %v1475_v17, %v1474_v16 }
 0x2e4   : > { %v1490_v21 = vpack.c.bf16 %v1473_v19, %v1472_v18 }
 0x2e6   : > { %2235 = vmatprep.mubr.bf16.mxu1 %v1490_v21 }
 0x2e7   : > { %2236 = vmatmul.mubr.bf16.gmra.mrb[60].mxu1 %v1491_v20 }
 0x382   : > { %v2209_v3 = vpop.f32.mrb[32].mxu1 }
 0x383   : > { %v1606_v24 = vadd.f32 %v2209_v3, %v2575_v22  ;;  %v1597_v25 = vpop.f32.mrb[33].mxu1 }
 0x384   : > { %v1598_v26 = vadd.f32 %v2575_v22, %v1597_v25  ;;  %v2210_v27 = vpop.f32.mrb[34].mxu1 }
 0x385   : > { %vm1726_vm11 = vcmp.gt.f32.partialorder %v1606_v24, 0.0  ;;  %v1758_v28 = vmul.f32 0.1, %v1606_v24  ;;  %v1609_v29 = vadd.f32 %v2210_v27, %v2575_v22  ;;  %v1600_v30 = vpop.f32.mrb[35].mxu1 }
 0x386   : > { %vm1724_vm12 = vcmp.gt.f32.partialorder %v1598_v26, 0.0  ;;  %v1756_v31 = vmul.f32 0.1, %v1598_v26  ;;  %v1601_v32 = vadd.f32 %v2575_v22, %v1600_v30 }
 0x387   : > { %v1790_v33 = vsel %vm1726_vm11, %v1606_v24, %v1758_v28  ;;  %vm1727_vm13 = vcmp.gt.f32.partialorder %v1609_v29, 0.0  ;;  %v1759_v34 = vmul.f32 0.1, %v1609_v29 }
 0x388   : > { %1822 = vst.msk [vmem:[%s2583_s19 + $0x10] sm:$0xff] %vm464_vm0, %v1790_v33  ;;  %v1788_v35 = vsel %vm1724_vm12, %v1598_v26, %v1756_v31  ;;  %vm1725_vm14 = vcmp.gt.f32.partialorder %v1601_v32, 0.0  ;;  %v1757_v36 = vmul.f32 0.1, %v1601_v32 }
 0x389   : > { %1820 = vst.msk [vmem:[%s2583_s19] sm:$0xff] %vm464_vm0, %v1788_v35  ;;  %v1791_v37 = vsel %vm1727_vm13, %v1609_v29, %v1759_v34 }
 0x38a   : > { %1823 = vst.msk [vmem:[%s2583_s19 + $0x18] sm:$0xff] %vm464_vm0, %v1791_v37  ;;  %v1789_v38 = vsel %vm1725_vm14, %v1601_v32, %v1757_v36  ;;  %v2213_v39 = vpop.f32.mrb[36].mxu1 }
 0x38b   : > { %1821 = vst.msk [vmem:[%s2583_s19 + $0x8] sm:$0xff] %vm464_vm0, %v1789_v38  ;;  %v1622_v40 = vadd.f32 %v2213_v39, %v2575_v22  ;;  %v1613_v41 = vpop.f32.mrb[37].mxu1 }
 0x38c   : > { %v1614_v23 = vadd.f32 %v2575_v22, %v1613_v41  ;;  %v2214_v42 = vpop.f32.mrb[38].mxu1 }
 0x38d   : > { %vm1730_vm15 = vcmp.gt.f32.partialorder %v1622_v40, 0.0  ;;  %v1762_v43 = vmul.f32 0.1, %v1622_v40  ;;  %v1625_v44 = vadd.f32 %v2214_v42, %v2575_v22  ;;  %v1616_v45 = vpop.f32.mrb[39].mxu1 }
 0x38e   : > { %vm1728_vm1 = vcmp.gt.f32.partialorder %v1614_v23, 0.0  ;;  %v1760_v46 = vmul.f32 0.1, %v1614_v23  ;;  %v1617_v47 = vadd.f32 %v2575_v22, %v1616_v45 }
 0x38f   : > { %v1794_v49 = vsel %vm1730_vm15, %v1622_v40, %v1762_v43  ;;  %vm1731_vm2 = vcmp.gt.f32.partialorder %v1625_v44, 0.0  ;;  %v1763_v50 = vmul.f32 0.1, %v1625_v44 }
 0x390   : > { %1826 = vst.msk [vmem:[%s2583_s19 + $0x30] sm:$0xff] %vm464_vm0, %v1794_v49  ;;  %v1792_v51 = vsel %vm1728_vm1, %v1614_v23, %v1760_v46  ;;  %vm1729_vm3 = vcmp.gt.f32.partialorder %v1617_v47, 0.0  ;;  %v1761_v52 = vmul.f32 0.1, %v1617_v47 }
 0x391   : > { %1824 = vst.msk [vmem:[%s2583_s19 + $0x20] sm:$0xff] %vm464_vm0, %v1792_v51  ;;  %v1795_v53 = vsel %vm1731_vm2, %v1625_v44, %v1763_v50 }
 0x392   : > { %1827 = vst.msk [vmem:[%s2583_s19 + $0x38] sm:$0xff] %vm464_vm0, %v1795_v53  ;;  %v1793_v54 = vsel %vm1729_vm3, %v1617_v47, %v1761_v52  ;;  %v2217_v55 = vpop.f32.mrb[40].mxu1 }
 0x393   : > { %1825 = vst.msk [vmem:[%s2583_s19 + $0x28] sm:$0xff] %vm464_vm0, %v1793_v54  ;;  %v1638_v56 = vadd.f32 %v2217_v55, %v2575_v22  ;;  %v1629_v57 = vpop.f32.mrb[41].mxu1 }
 0x394   : > { %v1630_v58 = vadd.f32 %v2575_v22, %v1629_v57  ;;  %v2218_v59 = vpop.f32.mrb[42].mxu1 }
 0x395   : > { %vm1734_vm4 = vcmp.gt.f32.partialorder %v1638_v56, 0.0  ;;  %v1766_v60 = vmul.f32 0.1, %v1638_v56  ;;  %v1641_v61 = vadd.f32 %v2218_v59, %v2575_v22  ;;  %v1632_v62 = vpop.f32.mrb[43].mxu1 }
 0x396   : > { %vm1732_vm5 = vcmp.gt.f32.partialorder %v1630_v58, 0.0  ;;  %v1764_v63 = vmul.f32 0.1, %v1630_v58  ;;  %v1633_v0 = vadd.f32 %v2575_v22, %v1632_v62 }
 0x397   : > { %v1798_v1 = vsel %vm1734_vm4, %v1638_v56, %v1766_v60  ;;  %vm1735_vm6 = vcmp.gt.f32.partialorder %v1641_v61, 0.0  ;;  %v1767_v2 = vmul.f32 0.1, %v1641_v61 }
 0x398   : > { %1830 = vst.msk [vmem:[%s2583_s19 + $0x50] sm:$0xff] %vm464_vm0, %v1798_v1  ;;  %v1796_v48 = vsel %vm1732_vm5, %v1630_v58, %v1764_v63  ;;  %vm1733_vm7 = vcmp.gt.f32.partialorder %v1633_v0, 0.0  ;;  %v1765_v4 = vmul.f32 0.1, %v1633_v0 }
 0x399   : > { %1828 = vst.msk [vmem:[%s2583_s19 + $0x40] sm:$0xff] %vm464_vm0, %v1796_v48  ;;  %v1799_v5 = vsel %vm1735_vm6, %v1641_v61, %v1767_v2 }
 0x39a   : > { %1831 = vst.msk [vmem:[%s2583_s19 + $0x58] sm:$0xff] %vm464_vm0, %v1799_v5  ;;  %v1797_v6 = vsel %vm1733_vm7, %v1633_v0, %v1765_v4  ;;  %v2221_v7 = vpop.f32.mrb[44].mxu1 }
 0x39b   : > { %1829 = vst.msk [vmem:[%s2583_s19 + $0x48] sm:$0xff] %vm464_vm0, %v1797_v6  ;;  %v1654_v8 = vadd.f32 %v2221_v7, %v2575_v22  ;;  %v1645_v9 = vpop.f32.mrb[45].mxu1 }
 0x39c   : > { %v1646_v10 = vadd.f32 %v2575_v22, %v1645_v9  ;;  %v2222_v11 = vpop.f32.mrb[46].mxu1 }
 0x39d   : > { %vm1738_vm8 = vcmp.gt.f32.partialorder %v1654_v8, 0.0  ;;  %v1770_v12 = vmul.f32 0.1, %v1654_v8  ;;  %v1657_v13 = vadd.f32 %v2222_v11, %v2575_v22  ;;  %v1648_v14 = vpop.f32.mrb[47].mxu1 }
 0x39e   : > { %vm1736_vm9 = vcmp.gt.f32.partialorder %v1646_v10, 0.0  ;;  %v1768_v15 = vmul.f32 0.1, %v1646_v10  ;;  %v1649_v16 = vadd.f32 %v2575_v22, %v1648_v14 }
 0x39f   : > { %v1802_v17 = vsel %vm1738_vm8, %v1654_v8, %v1770_v12  ;;  %vm1739_vm10 = vcmp.gt.f32.partialorder %v1657_v13, 0.0  ;;  %v1771_v18 = vmul.f32 0.1, %v1657_v13 }
 0x3a0   : > { %1834 = vst.msk [vmem:[%s2583_s19 + $0x70] sm:$0xff] %vm464_vm0, %v1802_v17  ;;  %v1800_v19 = vsel %vm1736_vm9, %v1646_v10, %v1768_v15  ;;  %vm1737_vm11 = vcmp.gt.f32.partialorder %v1649_v16, 0.0  ;;  %v1769_v20 = vmul.f32 0.1, %v1649_v16 }
 0x3a1   : > { %1832 = vst.msk [vmem:[%s2583_s19 + $0x60] sm:$0xff] %vm464_vm0, %v1800_v19  ;;  %v1803_v21 = vsel %vm1739_vm10, %v1657_v13, %v1771_v18 }
 0x3a2   : > { %1835 = vst.msk [vmem:[%s2583_s19 + $0x78] sm:$0xff] %vm464_vm0, %v1803_v21  ;;  %v1801_v3 = vsel %vm1737_vm11, %v1649_v16, %v1769_v20  ;;  %v2225_v24 = vpop.f32.mrb[48].mxu1 }
 0x3a3   : > { %1833 = vst.msk [vmem:[%s2583_s19 + $0x68] sm:$0xff] %vm464_vm0, %v1801_v3  ;;  %v1670_v25 = vadd.f32 %v2225_v24, %v2575_v22  ;;  %v1661_v26 = vpop.f32.mrb[49].mxu1 }
 0x3a4   : > { %v1662_v27 = vadd.f32 %v2575_v22, %v1661_v26  ;;  %v2226_v28 = vpop.f32.mrb[50].mxu1 }
 0x3a5   : > { %vm1742_vm12 = vcmp.gt.f32.partialorder %v1670_v25, 0.0  ;;  %v1774_v29 = vmul.f32 0.1, %v1670_v25  ;;  %v1673_v30 = vadd.f32 %v2226_v28, %v2575_v22  ;;  %v1664_v31 = vpop.f32.mrb[51].mxu1 }
 0x3a6   : > { %vm1740_vm13 = vcmp.gt.f32.partialorder %v1662_v27, 0.0  ;;  %v1772_v32 = vmul.f32 0.1, %v1662_v27  ;;  %v1665_v33 = vadd.f32 %v2575_v22, %v1664_v31 }
 0x3a7   : > { %v1806_v34 = vsel %vm1742_vm12, %v1670_v25, %v1774_v29  ;;  %vm1743_vm14 = vcmp.gt.f32.partialorder %v1673_v30, 0.0  ;;  %v1775_v35 = vmul.f32 0.1, %v1673_v30 }
 0x3a8   : > { %1838 = vst.msk [vmem:[%s2583_s19 + $0x90] sm:$0xff] %vm464_vm0, %v1806_v34  ;;  %v1804_v36 = vsel %vm1740_vm13, %v1662_v27, %v1772_v32  ;;  %vm1741_vm15 = vcmp.gt.f32.partialorder %v1665_v33, 0.0  ;;  %v1773_v37 = vmul.f32 0.1, %v1665_v33 }
 0x3a9   : > { %1836 = vst.msk [vmem:[%s2583_s19 + $0x80] sm:$0xff] %vm464_vm0, %v1804_v36  ;;  %v1807_v38 = vsel %vm1743_vm14, %v1673_v30, %v1775_v35 }
 0x3aa   : > { %1839 = vst.msk [vmem:[%s2583_s19 + $0x98] sm:$0xff] %vm464_vm0, %v1807_v38  ;;  %v1805_v39 = vsel %vm1741_vm15, %v1665_v33, %v1773_v37  ;;  %v2229_v40 = vpop.f32.mrb[52].mxu1 }
 0x3ab   : > { %1837 = vst.msk [vmem:[%s2583_s19 + $0x88] sm:$0xff] %vm464_vm0, %v1805_v39  ;;  %v1686_v41 = vadd.f32 %v2229_v40, %v2575_v22  ;;  %v1677_v23 = vpop.f32.mrb[53].mxu1 }
 0x3ac   : > { %v1678_v42 = vadd.f32 %v2575_v22, %v1677_v23  ;;  %v2230_v43 = vpop.f32.mrb[54].mxu1 }
 0x3ad   : > { %vm1746_vm1 = vcmp.gt.f32.partialorder %v1686_v41, 0.0  ;;  %v1778_v44 = vmul.f32 0.1, %v1686_v41  ;;  %v1689_v45 = vadd.f32 %v2230_v43, %v2575_v22  ;;  %v1680_v46 = vpop.f32.mrb[55].mxu1 }
 0x3ae   : > { %vm1744_vm2 = vcmp.gt.f32.partialorder %v1678_v42, 0.0  ;;  %v1776_v47 = vmul.f32 0.1, %v1678_v42  ;;  %v1681_v49 = vadd.f32 %v2575_v22, %v1680_v46 }
 0x3af   : > { %v1810_v50 = vsel %vm1746_vm1, %v1686_v41, %v1778_v44  ;;  %vm1747_vm3 = vcmp.gt.f32.partialorder %v1689_v45, 0.0  ;;  %v1779_v51 = vmul.f32 0.1, %v1689_v45 }
 0x3b0   : > { %1842 = vst.msk [vmem:[%s2583_s19 + $0xb0] sm:$0xff] %vm464_vm0, %v1810_v50  ;;  %v1808_v52 = vsel %vm1744_vm2, %v1678_v42, %v1776_v47  ;;  %vm1745_vm4 = vcmp.gt.f32.partialorder %v1681_v49, 0.0  ;;  %v1777_v53 = vmul.f32 0.1, %v1681_v49 }
 0x3b1   : > { %1840 = vst.msk [vmem:[%s2583_s19 + $0xa0] sm:$0xff] %vm464_vm0, %v1808_v52  ;;  %v1811_v54 = vsel %vm1747_vm3, %v1689_v45, %v1779_v51 }
 0x3b2   : > { %1843 = vst.msk [vmem:[%s2583_s19 + $0xb8] sm:$0xff] %vm464_vm0, %v1811_v54  ;;  %v1809_v55 = vsel %vm1745_vm4, %v1681_v49, %v1777_v53  ;;  %v2233_v56 = vpop.f32.mrb[56].mxu1 }
 0x3b3   : > { %1841 = vst.msk [vmem:[%s2583_s19 + $0xa8] sm:$0xff] %vm464_vm0, %v1809_v55  ;;  %v1702_v57 = vadd.f32 %v2233_v56, %v2575_v22  ;;  %v1693_v58 = vpop.f32.mrb[57].mxu1 }
 0x3b4   : > { %v1694_v59 = vadd.f32 %v2575_v22, %v1693_v58  ;;  %v2234_v60 = vpop.f32.mrb[58].mxu1 }
 0x3b5   : > { %vm1750_vm5 = vcmp.gt.f32.partialorder %v1702_v57, 0.0  ;;  %v1782_v61 = vmul.f32 0.1, %v1702_v57  ;;  %v1705_v62 = vadd.f32 %v2234_v60, %v2575_v22  ;;  %v1696_v63 = vpop.f32.mrb[59].mxu1 }
 0x3b6   : > { %vm1748_vm6 = vcmp.gt.f32.partialorder %v1694_v59, 0.0  ;;  %v1780_v0 = vmul.f32 0.1, %v1694_v59  ;;  %v1697_v1 = vadd.f32 %v2575_v22, %v1696_v63 }
 0x3b7   : > { %v1814_v2 = vsel %vm1750_vm5, %v1702_v57, %v1782_v61  ;;  %vm1751_vm7 = vcmp.gt.f32.partialorder %v1705_v62, 0.0  ;;  %v1783_v48 = vmul.f32 0.1, %v1705_v62 }
 0x3b8   : > { %1846 = vst.msk [vmem:[%s2583_s19 + $0xd0] sm:$0xff] %vm464_vm0, %v1814_v2  ;;  %v1812_v4 = vsel %vm1748_vm6, %v1694_v59, %v1780_v0  ;;  %vm1749_vm8 = vcmp.gt.f32.partialorder %v1697_v1, 0.0  ;;  %v1781_v5 = vmul.f32 0.1, %v1697_v1 }
 0x3b9   : > { %1844 = vst.msk [vmem:[%s2583_s19 + $0xc0] sm:$0xff] %vm464_vm0, %v1812_v4  ;;  %v1815_v6 = vsel %vm1751_vm7, %v1705_v62, %v1783_v48 }
 0x3ba   : > { %1847 = vst.msk [vmem:[%s2583_s19 + $0xd8] sm:$0xff] %vm464_vm0, %v1815_v6  ;;  %v1813_v7 = vsel %vm1749_vm8, %v1697_v1, %v1781_v5  ;;  %v2237_v8 = vpop.f32.mrb[60].mxu1 }
 0x3bb   : > { %1845 = vst.msk [vmem:[%s2583_s19 + $0xc8] sm:$0xff] %vm464_vm0, %v1813_v7  ;;  %v1718_v9 = vadd.f32 %v2237_v8, %v2575_v22  ;;  %v1709_v10 = vpop.f32.mrb[61].mxu1 }
 0x3bc   : > { %v1710_v11 = vadd.f32 %v2575_v22, %v1709_v10  ;;  %v2238_v12 = vpop.f32.mrb[62].mxu1 }
 0x3bd   : > { %vm1754_vm9 = vcmp.gt.f32.partialorder %v1718_v9, 0.0  ;;  %v1786_v13 = vmul.f32 0.1, %v1718_v9  ;;  %v1721_v14 = vadd.f32 %v2238_v12, %v2575_v22  ;;  %v1712_v15 = vpop.f32.mrb[63].mxu1 }
 0x3be   : > { %vm1752_vm10 = vcmp.gt.f32.partialorder %v1710_v11, 0.0  ;;  %v1784_v16 = vmul.f32 0.1, %v1710_v11  ;;  %v1713_v17 = vadd.f32 %v2575_v22, %v1712_v15 }
 0x3bf   : > { %v1818_v18 = vsel %vm1754_vm9, %v1718_v9, %v1786_v13  ;;  %vm1755_vm11 = vcmp.gt.f32.partialorder %v1721_v14, 0.0  ;;  %v1787_v19 = vmul.f32 0.1, %v1721_v14 }
 0x3c0   : > { %1850 = vst.msk [vmem:[%s2583_s19 + $0xf0] sm:$0xff] %vm464_vm0, %v1818_v18  ;;  %v1816_v20 = vsel %vm1752_vm10, %v1710_v11, %v1784_v16  ;;  %vm1753_vm12 = vcmp.gt.f32.partialorder %v1713_v17, 0.0  ;;  %v1785_v21 = vmul.f32 0.1, %v1713_v17 }
 0x3c1   : > { %1848 = vst.msk [vmem:[%s2583_s19 + $0xe0] sm:$0xff] %vm464_vm0, %v1816_v20  ;;  %v1819_v3 = vsel %vm1755_vm11, %v1721_v14, %v1787_v19 }
 0x3c2   : > { %1851 = vst.msk [vmem:[%s2583_s19 + $0xf8] sm:$0xff] %vm464_vm0, %v1819_v3  ;;  %v1817_v24 = vsel %vm1753_vm12, %v1713_v17, %v1785_v21 }
 0x3c3   : > { %1849 = vst.msk [vmem:[%s2583_s19 + $0xe8] sm:$0xff] %vm464_vm0, %v1817_v24 }
 0x3c4 PF: > { %s19_s30 = sadd.s32 1, %s2284_s30  }
 0x3c5   : > { %p16_p4 = scmp.ge.s32.totalorder %s19_s30, 4  }
 0x3c7   :  { %18 = sbr.rel (!%p16_p4) target bundleno = 1 (0x1), region = 86 }

</bundles_post_ra>
